<compile_context>
chip_gen: v5e
topology: v5e:2x2
jax: 0.10.0
libtpu: 0.0.40
codegen_flags: <defaults>
</compile_context>

<pallas_src>
import functools

import jax
import jax.numpy as jnp
from jax import lax
from jax.experimental import pallas as pl
from jax.experimental.pallas import tpu as pltpu


def _ce_rowloss_kernel(logits_ref, labels_ref, weight_ref, loss_ref, *,
                       ignore_index, tile_n):
    """Per-row softmax cross-entropy with ignore_index + sample weights.

    logits_ref: (tile_n, C) float      labels_ref: (tile_n, 1) int32
    weight_ref: (tile_n, 1) float32    loss_ref:   (1, tile_n) float32 (lane-dense)
    """
    x = logits_ref[...].astype(jnp.float32)                   # (tile_n, C)
    lbl = labels_ref[...]                                      # (tile_n, 1) int32
    w = weight_ref[...].astype(jnp.float32)                    # (tile_n, 1)

    # Numerically stable "centered" form: loss = log(sum exp(x - m)) - (x[lbl] - m)
    # (the max m cancels between the LSE and the picked logit).
    m = jnp.max(x, axis=-1, keepdims=True)                     # (tile_n, 1)
    xc = x - m
    s = jnp.sum(jnp.exp(xc), axis=-1, keepdims=True)           # (tile_n, 1)

    class_iota = lax.broadcasted_iota(jnp.int32, x.shape, 1)   # (tile_n, C)
    picked_c = jnp.sum(jnp.where(class_iota == lbl, xc, 0.0),
                       axis=-1, keepdims=True)                 # (tile_n, 1)

    # TODO(synk): torch errors on labels >= C or negative labels != ignore_index;
    # here such rows are silently masked to zero loss.
    valid = (lbl != ignore_index) & (lbl >= 0)
    per_row = jnp.where(valid, jnp.log(s) - picked_c, 0.0) * w  # (tile_n, 1)

    # sublane-major (tile_n, 1) -> lane-major (1, tile_n), 128 rows at a time,
    # via a masked sublane reduction (cheap VPU/XLU work, well-supported ops).
    ri = lax.broadcasted_iota(jnp.int32, (128, 128), 0)
    ci = lax.broadcasted_iota(jnp.int32, (128, 128), 1)
    eye = ri == ci
    for g in range(tile_n // 128):
        col = per_row[g * 128:(g + 1) * 128, :]                               # (128, 1)
        row = jnp.sum(jnp.where(eye, col, 0.0), axis=0, keepdims=True)        # (1, 128)
        loss_ref[:, g * 128:(g + 1) * 128] = row


def _pick_tile_n(n, c):
    """Row tile: ~1 MiB of f32 logits per block, multiple of 128, capped at 1024;
    keep >= 2 grid steps when there is enough work (v7x has 2 TensorCores)."""
    c_pad = ((max(c, 1) + 127) // 128) * 128
    tile = (1 << 20) // (4 * c_pad)
    tile = max(128, min(1024, (tile // 128) * 128))
    n_up = ((n + 127) // 128) * 128
    tile = min(tile, n_up)
    if tile >= n and n > 256:       # split so both v7x TensorCores get work
        tile = ((-(-n // 2) + 127) // 128) * 128
    return max(128, tile)


def _per_sample_ce(logits, labels, sample_weight, ignore_index):
    """Per-sample (weighted, ignore-masked) CE losses, shape (N,) float32."""
    n, c = logits.shape
    tile_n = _pick_tile_n(n, c)
    num_tiles = pl.cdiv(n, tile_n)
    n_total = num_tiles * tile_n

    # Only the tiny label/weight vectors are padded (rows >= n get ignore_index /
    # weight 0 so garbage from the ragged last logits block is masked out).
    # The big (N, C) logits tensor is NOT copied or padded.
    labels_col = labels.astype(jnp.int32).reshape(n, 1)
    weight_col = sample_weight.astype(jnp.float32).reshape(n, 1)
    pad = n_total - n
    if pad:
        labels_col = jnp.concatenate(
            [labels_col, jnp.full((pad, 1), ignore_index, jnp.int32)], axis=0)
        weight_col = jnp.concatenate(
            [weight_col, jnp.zeros((pad, 1), jnp.float32)], axis=0)

    kernel = functools.partial(_ce_rowloss_kernel,
                               ignore_index=ignore_index, tile_n=tile_n)

    itemsize = jnp.dtype(logits.dtype).itemsize
    cost = pl.CostEstimate(
        flops=int(6 * n * c),
        transcendentals=int(n * c),
        bytes_accessed=int(n * c * itemsize + 8 * n_total + 4 * n_total))

    out = pl.pallas_call(
        kernel,
        out_shape=jax.ShapeDtypeStruct((1, n_total), jnp.float32),
        grid_spec=pltpu.PrefetchScalarGridSpec(
            num_scalar_prefetch=0,
            grid=(num_tiles,),
            in_specs=[
                pl.BlockSpec((tile_n, c), lambda i: (i, 0)),
                pl.BlockSpec((tile_n, 1), lambda i: (i, 0)),
                pl.BlockSpec((tile_n, 1), lambda i: (i, 0)),
            ],
            out_specs=pl.BlockSpec((1, tile_n), lambda i: (0, i)),
        ),
        compiler_params=pltpu.CompilerParams(
            dimension_semantics=("parallel",),
            vmem_limit_bytes=32 * 1024 * 1024),
        cost_estimate=cost,
    )(logits, labels_col, weight_col)

    return out[0, :n]


class CrossEntropyLoss:
    """JAX/Pallas port of mmdet CrossEntropyLoss (softmax path, default config)."""

    def __init__(self, use_sigmoid=False, use_mask=False, reduction="mean",
                 class_weight=None, loss_weight=1.0, avg_non_ignore=False):
        # TODO(synk): use_sigmoid / use_mask variants (binary / mask CE) not ported;
        # the default softmax cross-entropy path is implemented.
        assert not use_sigmoid and not use_mask
        # TODO(synk): per-class weights (class_weight) not plumbed into the kernel.
        assert class_weight is None
        self.reduction = reduction
        self.loss_weight = loss_weight
        self.avg_non_ignore = avg_non_ignore

    def __call__(self, cls_score, label, weight=None, avg_factor=None,
                 reduction_override=None, ignore_index=-100):
        reduction = reduction_override if reduction_override else self.reduction
        n = cls_score.shape[0]

        sample_weight = (jnp.ones((n,), jnp.float32) if weight is None
                         else weight.astype(jnp.float32))

        per_sample = _per_sample_ce(cls_score, label, sample_weight, ignore_index)

        if reduction == "none":
            reduced = per_sample
        elif reduction == "sum":
            reduced = jnp.sum(per_sample)
        else:  # mean (mmdet convention: divide by N unless avg_factor/avg_non_ignore)
            if avg_factor is None and self.avg_non_ignore:
                avg_factor = jnp.sum((label != ignore_index).astype(jnp.float32))
            denom = jnp.float32(n) if avg_factor is None else jnp.asarray(
                avg_factor, jnp.float32)
            reduced = jnp.sum(per_sample) / denom

        return self.loss_weight * reduced


def _reference_per_sample(cls_score, label, ignore_index=-100):
    """Pure-JAX reference: F.cross_entropy(reduction='none', ignore_index=...)."""
    x = cls_score.astype(jnp.float32)
    lse = jax.scipy.special.logsumexp(x, axis=-1)
    safe_lbl = jnp.where((label == ignore_index) | (label < 0), 0, label)
    picked = jnp.take_along_axis(x, safe_lbl[:, None], axis=-1)[:, 0]
    valid = (label != ignore_index) & (label >= 0)
    return jnp.where(valid, lse - picked, 0.0)


if __name__ == "__main__":
    key = jax.random.PRNGKey(0)
    k1, k2, k3 = jax.random.split(key, 3)

    # small detection-head-like shapes: 300 samples, 21 classes (ragged vs tile)
    N, C = 300, 21
    logits = jax.random.normal(k1, (N, C), jnp.float32) * 2.0
    labels = jax.random.randint(k2, (N,), 0, C, jnp.int32)
    labels = labels.at[::17].set(-100)                 # some ignored samples
    weights = jax.random.uniform(k3, (N,), jnp.float32)

    loss_fn = CrossEntropyLoss(reduction="mean", loss_weight=1.0)

    # mean reduction, no sample weights
    loss_mean = jax.block_until_ready(loss_fn(logits, labels, ignore_index=-100))
    per_ref = _reference_per_sample(logits, labels)
    ref_mean = jnp.mean(per_ref)                       # mmdet default: divide by N
    assert jnp.allclose(loss_mean, ref_mean, rtol=1e-5, atol=1e-5), (loss_mean, ref_mean)

    # 'none' reduction with sample weights
    loss_none = jax.block_until_ready(
        loss_fn(logits, labels, weight=weights, reduction_override="none"))
    ref_none = per_ref * weights
    assert jnp.allclose(loss_none, ref_none, rtol=1e-5, atol=1e-5)

    print("KERNEL_OK")
</pallas_src>

<mosaic_0001>
module attributes {stable_mosaic.version = 11 : i64} {
  func.func @_ce_rowloss_kernel(%arg0: i32, %arg1: memref<256x21xf32, #tpu.memory_space<vmem>>, %arg2: memref<256x1xi32, #tpu.memory_space<vmem>>, %arg3: memref<256x1xf32, #tpu.memory_space<vmem>>, %arg4: memref<1x256xf32, #tpu.memory_space<vmem>>) attributes {dimension_semantics = [#tpu.dimension_semantics<parallel>], iteration_bounds = array<i64: 2>, scalar_prefetch = 0 : i64, scratch_operands = 0 : i64, tpu.core_type = #tpu.core_type<tc>, window_params = [{transform_indices = @transform_0, window_bounds = array<i64: 256, 21>}, {transform_indices = @transform_1, window_bounds = array<i64: 256, 1>}, {transform_indices = @transform_2, window_bounds = array<i64: 256, 1>}, {transform_indices = @transform_3, window_bounds = array<i64: 1, 256>}]} {
    %c0 = arith.constant 0 : index
    %c0_0 = arith.constant 0 : index
    %0 = vector.load %arg1[%c0, %c0_0] : memref<256x21xf32, #tpu.memory_space<vmem>>, vector<256x21xf32>
    %c0_1 = arith.constant 0 : index
    %c0_2 = arith.constant 0 : index
    %1 = vector.load %arg2[%c0_1, %c0_2] : memref<256x1xi32, #tpu.memory_space<vmem>>, vector<256x1xi32>
    %c0_3 = arith.constant 0 : index
    %c0_4 = arith.constant 0 : index
    %2 = vector.load %arg3[%c0_3, %c0_4] : memref<256x1xf32, #tpu.memory_space<vmem>>, vector<256x1xf32>
    %cst = arith.constant dense<0xFF800000> : vector<256xf32>
    %3 = vector.multi_reduction <maximumf>, %0, %cst [1] : vector<256x21xf32> to vector<256xf32>
    %4 = vector.shape_cast %3 : vector<256xf32> to vector<256x1xf32>
    %5 = vector.broadcast %4 : vector<256x1xf32> to vector<256x21xf32>
    %6 = arith.subf %0, %5 : vector<256x21xf32>
    %7 = math.exp %6 : vector<256x21xf32>
    %cst_5 = arith.constant dense<0.000000e+00> : vector<256xf32>
    %8 = vector.multi_reduction <add>, %7, %cst_5 [1] : vector<256x21xf32> to vector<256xf32>
    %9 = vector.shape_cast %8 : vector<256xf32> to vector<256x1xf32>
    %10 = tpu.iota {dimensions = array<i32: 1>} : vector<256x21xi32>
    %11 = vector.broadcast %1 : vector<256x1xi32> to vector<256x21xi32>
    %12 = arith.cmpi eq, %10, %11 : vector<256x21xi32>
    %cst_6 = arith.constant 0.000000e+00 : f32
    %13 = vector.broadcast %cst_6 : f32 to vector<256x21xf32>
    %14 = arith.select %12, %6, %13 : vector<256x21xi1>, vector<256x21xf32>
    %cst_7 = arith.constant dense<0.000000e+00> : vector<256xf32>
    %15 = vector.multi_reduction <add>, %14, %cst_7 [1] : vector<256x21xf32> to vector<256xf32>
    %16 = vector.shape_cast %15 : vector<256xf32> to vector<256x1xf32>
    %c-100_i32 = arith.constant -100 : i32
    %17 = vector.broadcast %c-100_i32 : i32 to vector<256x1xi32>
    %18 = arith.cmpi ne, %1, %17 : vector<256x1xi32>
    %c0_i32 = arith.constant 0 : i32
    %19 = vector.broadcast %c0_i32 : i32 to vector<256x1xi32>
    %20 = arith.cmpi sge, %1, %19 : vector<256x1xi32>
    %21 = arith.andi %18, %20 : vector<256x1xi1>
    %22 = math.log %9 : vector<256x1xf32>
    %23 = arith.subf %22, %16 : vector<256x1xf32>
    %cst_8 = arith.constant 0.000000e+00 : f32
    %24 = vector.broadcast %cst_8 : f32 to vector<256x1xf32>
    %25 = arith.select %21, %23, %24 : vector<256x1xi1>, vector<256x1xf32>
    %26 = arith.mulf %25, %2 : vector<256x1xf32>
    %27 = tpu.iota {dimensions = array<i32: 0>} : vector<128x128xi32>
    %28 = tpu.iota {dimensions = array<i32: 1>} : vector<128x128xi32>
    %29 = arith.cmpi eq, %27, %28 : vector<128x128xi32>
    %30 = vector.extract_strided_slice %26 {offsets = [0, 0], sizes = [128, 1], strides = [1, 1]} : vector<256x1xf32> to vector<128x1xf32>
    %cst_9 = arith.constant 0.000000e+00 : f32
    %31 = vector.shape_cast %30 : vector<128x1xf32> to vector<128x1xf32>
    %32 = vector.broadcast %31 : vector<128x1xf32> to vector<128x128xf32>
    %33 = vector.broadcast %cst_9 : f32 to vector<128x128xf32>
    %34 = arith.select %29, %32, %33 : vector<128x128xi1>, vector<128x128xf32>
    %cst_10 = arith.constant dense<0.000000e+00> : vector<128xf32>
    %35 = vector.multi_reduction <add>, %34, %cst_10 [0] : vector<128x128xf32> to vector<128xf32>
    %36 = vector.shape_cast %35 : vector<128xf32> to vector<1x128xf32>
    %c0_11 = arith.constant 0 : index
    %c0_12 = arith.constant 0 : index
    %37 = vector.load %arg4[%c0_11, %c0_12] : memref<1x256xf32, #tpu.memory_space<vmem>>, vector<1x128xf32>
    tpu.vector_store %arg4[%c0_11, %c0_12], %36 {strides = array<i32>} : memref<1x256xf32, #tpu.memory_space<vmem>>, vector<1x128xf32>,
    %38 = vector.extract_strided_slice %26 {offsets = [128, 0], sizes = [128, 1], strides = [1, 1]} : vector<256x1xf32> to vector<128x1xf32>
    %cst_13 = arith.constant 0.000000e+00 : f32
    %39 = vector.shape_cast %38 : vector<128x1xf32> to vector<128x1xf32>
    %40 = vector.broadcast %39 : vector<128x1xf32> to vector<128x128xf32>
    %41 = vector.broadcast %cst_13 : f32 to vector<128x128xf32>
    %42 = arith.select %29, %40, %41 : vector<128x128xi1>, vector<128x128xf32>
    %cst_14 = arith.constant dense<0.000000e+00> : vector<128xf32>
    %43 = vector.multi_reduction <add>, %42, %cst_14 [0] : vector<128x128xf32> to vector<128xf32>
    %44 = vector.shape_cast %43 : vector<128xf32> to vector<1x128xf32>
    %c0_15 = arith.constant 0 : index
    %c128 = arith.constant 128 : index
    %45 = vector.load %arg4[%c0_15, %c128] : memref<1x256xf32, #tpu.memory_space<vmem>>, vector<1x128xf32>
    tpu.vector_store %arg4[%c0_15, %c128], %44 {strides = array<i32>} : memref<1x256xf32, #tpu.memory_space<vmem>>, vector<1x128xf32>,
    return
  }
  func.func @transform_0(%arg0: i32) -> (i32, i32) {
    %c0_i32 = arith.constant 0 : i32
    %c0_i32_0 = arith.constant 0 : i32
    return %arg0, %c0_i32 : i32, i32
  }
  func.func @transform_1(%arg0: i32) -> (i32, i32) {
    %c0_i32 = arith.constant 0 : i32
    %c0_i32_0 = arith.constant 0 : i32
    return %arg0, %c0_i32 : i32, i32
  }
  func.func @transform_2(%arg0: i32) -> (i32, i32) {
    %c0_i32 = arith.constant 0 : i32
    %c0_i32_0 = arith.constant 0 : i32
    return %arg0, %c0_i32 : i32, i32
  }
  func.func @transform_3(%arg0: i32) -> (i32, i32) {
    %c0_i32 = arith.constant 0 : i32
    %c0_i32_0 = arith.constant 0 : i32
    return %c0_i32, %arg0 : i32, i32
  }
}

</mosaic_0001>

<bundles_post_ra>
// kernel: tpu_custom_call.1
= control target key start
LH: loop header
LB: loop body
LE: loop exit
PB: predicated region body
PF: predicated region fallthrough
CT: control target
= control target key end

     0   :  { %8 = vsyncpa [#allocation3], 0  ;;  %s2868_s0 = inlined_call_operand.vmem [shape: f32[300,21], index: 0, kind: input, shape index: {}]   ;;  %s2869_s1 = inlined_call_operand.vmem [shape: s32[512,1], index: 1, kind: input, shape index: {}]   ;;  %s2870_s2 = inlined_call_operand.vmem [shape: f32[512,1], index: 2, kind: input, shape index: {}]   ;;  %s2871_s3 = inlined_call_operand.hbm [shape: f32[1,512], index: 3, kind: output, shape index: {}]  }
   0x1   :  { %10 = vsyncpa [#allocation3 + $0x1], 0  ;;  %s1778_s12 = smov 0   ;;  %s1780_s13 = smov 0  }
   0x2   :  { %s1782_s14 = smov 0   ;;  %s1784_s15 = smov 0  }
   0x3 LB: > { %s1799_s16 = sadd.s32 4294967295, %s1755_s15   ;;  %s1507_s17 = sadd.s32 4294967294, %s1755_s15   ;;  %s1755_s15 = sphi %s1784_s15, %s3007_s15   ;;  %s1751_s14 = sphi %s1782_s14, %s3006_s14   ;;  %s1747_s13 = sphi %s1780_s13, %s3005_s13   ;;  %s1743_s12 = sphi %s1778_s12, %s3004_s12  }
   0x4   : > { %s1803_s18 = sadd.s32 1, %s1755_s15   ;;  %s101_s19 = sadd.s32 1, %s1751_s14 }
   0x5   : > { %s98_s20 = ssub.s32 %s1755_s15, %s1803_s18  ;;  %p111_p0 = scmp.ne.s32.totalorder %s1751_s14, %s1747_s13 }
   0x6   : > { %p99_p1 = scmp.eq.s32.totalorder %s98_s20, 0  ;;  %p112_p2 = scmp.eq.s32.totalorder %s1799_s16, 1 }
   0x7   : > { %p117_p3 = scmp.ne.s32.totalorder %s1747_s13, %s1743_s12  ;;  %p118_p4 = scmp.eq.s32.totalorder %s1507_s17, 1 }
   0x8   : > { %s1814_s21 = scalar_select %p99_p1, %s1751_s14, %s101_s19  }
   0x9   : > { %p1816_p5 = por %p112_p2, %p111_p0  ;;  %p1820_p6 = por %p118_p4, %p117_p3 }
   0xa   : > { %p1510_p7 = scmp.ge.s32.totalorder %s1755_s15, 1  ;;  %p171_p8 = scmp.lt.s32.totalorder %s1755_s15, 3 }
   0xc   : > { %p172_p9 = pnand %p1510_p7, %p171_p8 }
   0xe   : > { %175 = sbr.rel (%p172_p9) target bundleno = 827 (0x33b), region = 32 }
  0x13   : > { %s1827_s24 = sshll.u32 %s1799_s16, 5  ;;  %vm332_vm0 = vcmask 171008   ;;  %s206_s10 = sand.u32 1, %s1747_s13  }
  0x14   : > { %p214_p10 = scmp.lt.s32.totalorder %s1827_s24, 37  ;;  %p224_p11 = scmp.lt.s32.totalorder %s1827_s24, 63 }
  0x15   : > { %s1511_s11 = sshll.u32 %s206_s10, 1  ;;  %s1519_s19 = sshll.u32 %s1799_s16, 1 }
  0x16   : > { %s215_s25 = scalar_select %p214_p10, %s1827_s24, 37 }
  0x17   : > { %s3009_s24 = smov (!%p224_p11, %s1827_s24), 63  ;;  %s2793_s17 = scalar_lea.vmem [#allocation2], %s1511_s11 }
  0x18   : > { %s1513_s26 = sshll.u32 %s215_s25, 3  ;;  %s1515_s30 = sshll.u32 %s3009_s24, 3 }
  0x19   : > { %s1834_s29 = scalar_lea.vmem %s2868_s0, %s1513_s26  ;;  %s2166_s6 = scalar_lea.vmem %s2869_s1, %s1515_s30 }
  0x1a   : > { %v1837_v0 = vld [vmem:[%s1834_s29 + $0x20] sm:$0xff]  ;;  %v1840_v1 = vld [vmem:[%s1834_s29 + $0x10] sm:$0xff]  ;;  %v1852_v6 = vld [vmem:[%s1834_s29 + $0x28] sm:$0xff]  ;;  %s2471_s9 = scalar_lea.vmem %s2870_s2, %s1515_s30  ;;  %s1419_s25 = scalar_lea.hbm %s2871_s3, %s1519_s19 }
  0x1b   : > { %v1843_v2 = vld [vmem:[%s1834_s29] sm:$0xff]  ;;  %v345_v3 = vsel %vm332_vm0, %v1837_v0, -inf  ;;  %v339_v4 = vsel %vm332_vm0, %v1840_v1, -inf  ;;  %v1855_v7 = vld [vmem:[%s1834_s29 + $0x18] sm:$0xff]  ;;  %v1858_v8 = vld [vmem:[%s1834_s29 + $0x8] sm:$0xff]  ;;  %v348_v9 = vsel %vm332_vm0, %v1852_v6, -inf }
  0x1c   : > { %v333_v5 = vsel %vm332_vm0, %v1843_v2, -inf  ;;  %346 = vmax.xlane.f32.xlu2 %v345_v3  ;;  %340 = vmax.xlane.f32.xlu1 %v339_v4  ;;  %v342_v10 = vsel %vm332_vm0, %v1855_v7, -inf  ;;  %v336_v11 = vsel %vm332_vm0, %v1858_v8, -inf  ;;  %v1867_v12 = vld [vmem:[%s1834_s29 + $0x40] sm:$0xff]  ;;  %v1870_v13 = vld [vmem:[%s1834_s29 + $0x38] sm:$0xff]  ;;  %v1873_v14 = vld [vmem:[%s1834_s29 + $0x30] sm:$0xff] }
  0x1d   : > { %334 = vmax.xlane.f32.xlu0 %v333_v5  ;;  %v357_v15 = vsel %vm332_vm0, %v1867_v12, -inf  ;;  %v354_v16 = vsel %vm332_vm0, %v1870_v13, -inf  ;;  %v351_v17 = vsel %vm332_vm0, %v1873_v14, -inf  ;;  %v1882_v18 = vld [vmem:[%s1834_s29 + $0x58] sm:$0xff]  ;;  %v1885_v19 = vld [vmem:[%s1834_s29 + $0x50] sm:$0xff]  ;;  %v1888_v20 = vld [vmem:[%s1834_s29 + $0x48] sm:$0xff] }
  0x1e   : > { %v366_v21 = vsel %vm332_vm0, %v1882_v18, -inf  ;;  %v363_v22 = vsel %vm332_vm0, %v1885_v19, -inf  ;;  %v360_v23 = vsel %vm332_vm0, %v1888_v20, -inf  ;;  %v1897_v24 = vld [vmem:[%s1834_s29 + $0x70] sm:$0xff]  ;;  %v1900_v25 = vld [vmem:[%s1834_s29 + $0x68] sm:$0xff]  ;;  %v1903_v26 = vld [vmem:[%s1834_s29 + $0x60] sm:$0xff] }
  0x1f   : > { %v375_v27 = vsel %vm332_vm0, %v1897_v24, -inf  ;;  %v372_v28 = vsel %vm332_vm0, %v1900_v25, -inf  ;;  %v369_v29 = vsel %vm332_vm0, %v1903_v26, -inf  ;;  %v1912_v30 = vld [vmem:[%s1834_s29 + $0x88] sm:$0xff]  ;;  %v1915_v31 = vld [vmem:[%s1834_s29 + $0x80] sm:$0xff]  ;;  %v1918_v32 = vld [vmem:[%s1834_s29 + $0x78] sm:$0xff] }
  0x20   : > { %v384_v33 = vsel %vm332_vm0, %v1912_v30, -inf  ;;  %v381_v34 = vsel %vm332_vm0, %v1915_v31, -inf  ;;  %v378_v35 = vsel %vm332_vm0, %v1918_v32, -inf  ;;  %v1927_v36 = vld [vmem:[%s1834_s29 + $0xa0] sm:$0xff]  ;;  %v1930_v37 = vld [vmem:[%s1834_s29 + $0x98] sm:$0xff]  ;;  %v1933_v38 = vld [vmem:[%s1834_s29 + $0x90] sm:$0xff] }
  0x21   : > { %v393_v39 = vsel %vm332_vm0, %v1927_v36, -inf  ;;  %v390_v40 = vsel %vm332_vm0, %v1930_v37, -inf  ;;  %v387_v41 = vsel %vm332_vm0, %v1933_v38, -inf  ;;  %v1942_v42 = vld [vmem:[%s1834_s29 + $0xb8] sm:$0xff]  ;;  %v1945_v43 = vld [vmem:[%s1834_s29 + $0xb0] sm:$0xff]  ;;  %v1948_v44 = vld [vmem:[%s1834_s29 + $0xa8] sm:$0xff] }
  0x22   : > { %v402_v45 = vsel %vm332_vm0, %v1942_v42, -inf  ;;  %v399_v46 = vsel %vm332_vm0, %v1945_v43, -inf  ;;  %v396_v47 = vsel %vm332_vm0, %v1948_v44, -inf  ;;  %v1957_v48 = vld [vmem:[%s1834_s29 + $0xd0] sm:$0xff]  ;;  %v1960_v49 = vld [vmem:[%s1834_s29 + $0xc8] sm:$0xff]  ;;  %v1963_v50 = vld [vmem:[%s1834_s29 + $0xc0] sm:$0xff] }
  0x23   : > { %v411_v51 = vsel %vm332_vm0, %v1957_v48, -inf  ;;  %v408_v52 = vsel %vm332_vm0, %v1960_v49, -inf  ;;  %v405_v53 = vsel %vm332_vm0, %v1963_v50, -inf  ;;  %v1972_v54 = vld [vmem:[%s1834_s29 + $0xe8] sm:$0xff]  ;;  %v1975_v55 = vld [vmem:[%s1834_s29 + $0xe0] sm:$0xff]  ;;  %v1978_v56 = vld [vmem:[%s1834_s29 + $0xd8] sm:$0xff] }
  0x24   : > { %349 = vmax.xlane.f32.xlu2 %v348_v9  ;;  %343 = vmax.xlane.f32.xlu1 %v342_v10  ;;  %v420_v57 = vsel %vm332_vm0, %v1972_v54, -inf  ;;  %v417_v58 = vsel %vm332_vm0, %v1975_v55, -inf  ;;  %v414_v59 = vsel %vm332_vm0, %v1978_v56, -inf  ;;  %v1987_v60 = vld [vmem:[%s1834_s29 + $0xf8] sm:$0xff]  ;;  %v1990_v61 = vld [vmem:[%s1834_s29 + $0xf0] sm:$0xff]  ;;  %s1421_s26 = sshll.u32 %s2793_s17, 4  ;;  %s1422_s26 = int_to_ptr.vmem [resolvable:$true] %s1421_s26 }
  0x25   : > { %337 = vmax.xlane.f32.xlu0 %v336_v11  ;;  %v426_v62 = vsel %vm332_vm0, %v1987_v60, -inf  ;;  %v423_v63 = vsel %vm332_vm0, %v1990_v61, -inf  ;;  %s1423_s27 = sshll.u32 %s1419_s25, 4  ;;  %s1409_s28 = scalar_lea.sflag [#allocation3], %s206_s10  ;;  %s1424_s27 = int_to_ptr.hbm [resolvable:$true] %s1423_s27 }
  0x26   : > { %s1707_s16 = sshra.s32 %s1424_s27, 4  ;;  %s1713_s5 = scalar_lea.hbm %s2871_s3, 4  ;;  %s1708_s16 = int_to_ptr.hbm [resolvable:$true] %s1707_s16 }
  0x27   : > { %s1709_s29 = scalar_lea.hbm %s1708_s16, 2  ;;  %p1714_p1 = scmp.lt.s32.totalorder %s1708_s16, %s2871_s3 }
  0x28   : > { %p1710_p12 = scmp.ne.s32.totalorder %s1708_s16, %s1709_s29  ;;  %p1715_p2 = scmp.lt.s32.totalorder %s1713_s5, %s1709_s29 }
  0x2a   : > { %p1711_p13 = pnand %p1710_p12, %p1816_p5  ;;  %p1716_p3 = por %p1715_p2, %p1714_p1 }
  0x2c   : > { %358 = vmax.xlane.f32.xlu2 %v357_v15  ;;  %355 = vmax.xlane.f32.xlu1 %v354_v16  ;;  %p1712_p0 = pneg %p1711_p13 }
  0x2d   : > { %352 = vmax.xlane.f32.xlu0 %v351_v17 }
  0x2e   : > { %p1717_p4 = pnand %p1716_p3, %p1712_p0 }
  0x34   : > { %367 = vmax.xlane.f32.xlu2 %v366_v21  ;;  %364 = vmax.xlane.f32.xlu1 %v363_v22 }
  0x35   : > { %361 = vmax.xlane.f32.xlu0 %v360_v23 }
  0x3c   : > { %376 = vmax.xlane.f32.xlu2 %v375_v27  ;;  %373 = vmax.xlane.f32.xlu1 %v372_v28 }
  0x3d   : > { %370 = vmax.xlane.f32.xlu0 %v369_v29 }
  0x44   : > { %385 = vmax.xlane.f32.xlu2 %v384_v33  ;;  %382 = vmax.xlane.f32.xlu1 %v381_v34 }
  0x45   : > { %379 = vmax.xlane.f32.xlu0 %v378_v35 }
  0x4c   : > { %394 = vmax.xlane.f32.xlu2 %v393_v39  ;;  %391 = vmax.xlane.f32.xlu1 %v390_v40 }
  0x4d   : > { %388 = vmax.xlane.f32.xlu0 %v387_v41 }
  0x54   : > { %403 = vmax.xlane.f32.xlu2 %v402_v45  ;;  %400 = vmax.xlane.f32.xlu1 %v399_v46 }
  0x55   : > { %397 = vmax.xlane.f32.xlu0 %v396_v47 }
  0x5c   : > { %412 = vmax.xlane.f32.xlu2 %v411_v51  ;;  %409 = vmax.xlane.f32.xlu1 %v408_v52 }
  0x5d   : > { %406 = vmax.xlane.f32.xlu0 %v405_v53 }
  0x64   : > { %421 = vmax.xlane.f32.xlu2 %v420_v57  ;;  %418 = vmax.xlane.f32.xlu1 %v417_v58 }
  0x65   : > { %415 = vmax.xlane.f32.xlu0 %v414_v59 }
  0x6c   : > { %427 = vmax.xlane.f32.xlu1 %v426_v62 }
  0x6d   : > { %424 = vmax.xlane.f32.xlu0 %v423_v63 }
  0x8f   : > { %v347_v3 = vpop.xlane.xlu2 %346  ;;  %v341_v4 = vpop.xlane.xlu1 %340 }
  0x90   : > { %v1997_v5 = vsub.f32 %v1840_v1, %v341_v4  ;;  %v335_v9 = vpop.xlane.xlu0 %334  ;;  %v2016_v29 = vsub.f32 %v1837_v0, %v347_v3 }
  0x91   : > { %v2000_v10 = vsub.f32 %v1843_v2, %v335_v9 }
  0x92   : > { %v465_v11 = vmul.f32 1.442695, %v1997_v5 }
  0x93   : > { %v461_v15 = vmul.f32 1.442695, %v2000_v10 }
  0x94   : > { %1565 = vpow2.f32 %v465_v11 }
  0x95   : > { %1567 = vpow2.f32 %v461_v15 }
  0x97   : > { %v350_v16 = vpop.xlane.xlu2 %349  ;;  %v344_v17 = vpop.xlane.xlu1 %343 }
  0x98   : > { %v2005_v21 = vsub.f32 %v1852_v6, %v350_v16  ;;  %v2008_v22 = vsub.f32 %v1855_v7, %v344_v17  ;;  %v338_v1 = vpop.xlane.xlu0 %337 }
  0x99   : > { %v2011_v23 = vsub.f32 %v1858_v8, %v338_v1  ;;  %v469_v8 = vmul.f32 1.442695, %v2016_v29 }
  0x9a   : > { %v471_v2 = vmul.f32 1.442695, %v2005_v21  ;;  %v467_v27 = vmul.f32 1.442695, %v2008_v22  ;;  %v1566_v28 = vpop.eup %1565 }
  0x9b   : > { %v463_v33 = vmul.f32 1.442695, %v2011_v23  ;;  %v1568_v34 = vpop.eup %1567  ;;  %v531_v6 = vsel %vm332_vm0, %v1566_v28, 0.0 }
  0x9c   : > { %1569 = vpow2.f32 %v471_v2  ;;  %532 = vadd.xlane.f32.xlu1 %v531_v6  ;;  %v525_v7 = vsel %vm332_vm0, %v1568_v34, 0.0 }
  0x9d   : > { %1571 = vpow2.f32 %v467_v27  ;;  %526 = vadd.xlane.f32.xlu2 %v525_v7 }
  0x9e   : > { %1573 = vpow2.f32 %v463_v33 }
  0x9f   : > { %v359_v35 = vpop.xlane.xlu2 %358  ;;  %v356_v39 = vpop.xlane.xlu1 %355  ;;  %1575 = vpow2.f32 %v469_v8 }
  0xa0   : > { %v2023_v40 = vsub.f32 %v1867_v12, %v359_v35  ;;  %v353_v0 = vpop.xlane.xlu0 %352  ;;  %v2030_v47 = vsub.f32 %v1870_v13, %v356_v39 }
  0xa1   : > { %v2026_v41 = vsub.f32 %v1873_v14, %v353_v0 }
  0xa2   : > { %v1570_v45 = vpop.eup %1569  ;;  %v477_v46 = vmul.f32 1.442695, %v2023_v40  ;;  %v475_v58 = vmul.f32 1.442695, %v2030_v47 }
  0xa3   : > { %v1572_v51 = vpop.eup %1571  ;;  %v473_v52 = vmul.f32 1.442695, %v2026_v41  ;;  %v540_v53 = vsel %vm332_vm0, %v1570_v45, 0.0 }
  0xa4   : > { %v1574_v57 = vpop.eup %1573  ;;  %1577 = vpow2.f32 %v477_v46  ;;  %v534_v12 = vsel %vm332_vm0, %v1572_v51, 0.0  ;;  %541 = vadd.xlane.f32.xlu1 %v540_v53 }
  0xa5   : > { %1579 = vpow2.f32 %v473_v52  ;;  %v528_v14 = vsel %vm332_vm0, %v1574_v57, 0.0  ;;  %535 = vadd.xlane.f32.xlu2 %v534_v12  ;;  %v1576_v3 = vpop.eup %1575 }
  0xa6   : > { %529 = vadd.xlane.f32.xlu0 %v528_v14  ;;  %1581 = vpow2.f32 %v475_v58 }
  0xa7   : > { %v368_v13 = vpop.xlane.xlu2 %367  ;;  %v365_v59 = vpop.xlane.xlu1 %364 }
  0xa8   : > { %v2038_v62 = vsub.f32 %v1882_v18, %v368_v13  ;;  %v362_v63 = vpop.xlane.xlu0 %361  ;;  %v2045_v15 = vsub.f32 %v1885_v19, %v365_v59 }
  0xa9   : > { %v2041_v4 = vsub.f32 %v1888_v20, %v362_v63  ;;  %v537_v20 = vsel %vm332_vm0, %v1576_v3, 0.0 }
  0xaa   : > { %v1578_v9 = vpop.eup %1577  ;;  %v483_v11 = vmul.f32 1.442695, %v2038_v62  ;;  %v481_v2 = vmul.f32 1.442695, %v2045_v15 }
  0xab   : > { %v1580_v16 = vpop.eup %1579  ;;  %v479_v17 = vmul.f32 1.442695, %v2041_v4  ;;  %v549_v1 = vsel %vm332_vm0, %v1578_v9, 0.0 }
  0xac   : > { %1583 = vpow2.f32 %v483_v11  ;;  %v543_v18 = vsel %vm332_vm0, %v1580_v16, 0.0  ;;  %550 = vadd.xlane.f32.xlu1 %v549_v1  ;;  %v1582_v19 = vpop.eup %1581 }
  0xad   : > { %1585 = vpow2.f32 %v479_v17  ;;  %544 = vadd.xlane.f32.xlu2 %v543_v18  ;;  %v546_v46 = vsel %vm332_vm0, %v1582_v19, 0.0 }
  0xae   : > { %538 = vadd.xlane.f32.xlu0 %v537_v20  ;;  %1587 = vpow2.f32 %v481_v2 }
  0xaf   : > { %v377_v27 = vpop.xlane.xlu2 %376  ;;  %v374_v28 = vpop.xlane.xlu1 %373 }
  0xb0   : > { %v2053_v33 = vsub.f32 %v1897_v24, %v377_v27  ;;  %v371_v34 = vpop.xlane.xlu0 %370  ;;  %v2060_v35 = vsub.f32 %v1900_v25, %v374_v28 }
  0xb1   : > { %v2056_v6 = vsub.f32 %v1903_v26, %v371_v34 }
  0xb2   : > { %v1584_v7 = vpop.eup %1583  ;;  %v489_v8 = vmul.f32 1.442695, %v2053_v33  ;;  %v487_v26 = vmul.f32 1.442695, %v2060_v35 }
  0xb3   : > { %v1586_v39 = vpop.eup %1585  ;;  %v485_v0 = vmul.f32 1.442695, %v2056_v6  ;;  %v558_v45 = vsel %vm332_vm0, %v1584_v7, 0.0 }
  0xb4   : > { %1589 = vpow2.f32 %v489_v8  ;;  %v552_v24 = vsel %vm332_vm0, %v1586_v39, 0.0  ;;  %559 = vadd.xlane.f32.xlu1 %v558_v45  ;;  %v1588_v25 = vpop.eup %1587 }
  0xb5   : > { %1591 = vpow2.f32 %v485_v0  ;;  %553 = vadd.xlane.f32.xlu2 %v552_v24  ;;  %v555_v9 = vsel %vm332_vm0, %v1588_v25, 0.0 }
  0xb6   : > { %547 = vadd.xlane.f32.xlu0 %v546_v46  ;;  %1593 = vpow2.f32 %v487_v26 }
  0xb7   : > { %v386_v51 = vpop.xlane.xlu2 %385  ;;  %v383_v52 = vpop.xlane.xlu1 %382 }
  0xb8   : > { %v2068_v53 = vsub.f32 %v1912_v30, %v386_v51  ;;  %v380_v57 = vpop.xlane.xlu0 %379  ;;  %v2075_v13 = vsub.f32 %v1915_v31, %v383_v52 }
  0xb9   : > { %v2071_v12 = vsub.f32 %v1918_v32, %v380_v57 }
  0xba   : > { %v1590_v14 = vpop.eup %1589  ;;  %v495_v58 = vmul.f32 1.442695, %v2068_v53  ;;  %v493_v32 = vmul.f32 1.442695, %v2075_v13 }
  0xbb   : > { %v1592_v59 = vpop.eup %1591  ;;  %v491_v63 = vmul.f32 1.442695, %v2071_v12  ;;  %v567_v3 = vsel %vm332_vm0, %v1590_v14, 0.0 }
  0xbc   : > { %1595 = vpow2.f32 %v495_v58  ;;  %v561_v30 = vsel %vm332_vm0, %v1592_v59, 0.0  ;;  %568 = vadd.xlane.f32.xlu1 %v567_v3  ;;  %v1594_v31 = vpop.eup %1593 }
  0xbd   : > { %1597 = vpow2.f32 %v491_v63  ;;  %562 = vadd.xlane.f32.xlu2 %v561_v30  ;;  %v564_v7 = vsel %vm332_vm0, %v1594_v31, 0.0 }
  0xbe   : > { %556 = vadd.xlane.f32.xlu0 %v555_v9  ;;  %1599 = vpow2.f32 %v493_v32 }
  0xbf   : > { %v395_v11 = vpop.xlane.xlu2 %394  ;;  %v392_v16 = vpop.xlane.xlu1 %391 }
  0xc0   : > { %v2083_v17 = vsub.f32 %v1927_v36, %v395_v11  ;;  %v389_v1 = vpop.xlane.xlu0 %388  ;;  %v2090_v27 = vsub.f32 %v1930_v37, %v392_v16 }
  0xc1   : > { %v2086_v18 = vsub.f32 %v1933_v38, %v389_v1 }
  0xc2   : > { %v1596_v20 = vpop.eup %1595  ;;  %v501_v2 = vmul.f32 1.442695, %v2083_v17  ;;  %v499_v38 = vmul.f32 1.442695, %v2090_v27 }
  0xc3   : > { %v1598_v28 = vpop.eup %1597  ;;  %v497_v19 = vmul.f32 1.442695, %v2086_v18  ;;  %v576_v34 = vsel %vm332_vm0, %v1596_v20, 0.0 }
  0xc4   : > { %1601 = vpow2.f32 %v501_v2  ;;  %v570_v36 = vsel %vm332_vm0, %v1598_v28, 0.0  ;;  %577 = vadd.xlane.f32.xlu1 %v576_v34  ;;  %v1600_v37 = vpop.eup %1599 }
  0xc5   : > { %1603 = vpow2.f32 %v497_v19  ;;  %571 = vadd.xlane.f32.xlu2 %v570_v36  ;;  %v573_v14 = vsel %vm332_vm0, %v1600_v37, 0.0 }
  0xc6   : > { %565 = vadd.xlane.f32.xlu0 %v564_v7  ;;  %1605 = vpow2.f32 %v499_v38 }
  0xc7   : > { %v404_v8 = vpop.xlane.xlu2 %403  ;;  %v401_v39 = vpop.xlane.xlu1 %400 }
  0xc8   : > { %v2098_v0 = vsub.f32 %v1942_v42, %v404_v8  ;;  %v398_v45 = vpop.xlane.xlu0 %397  ;;  %v2105_v51 = vsub.f32 %v1945_v43, %v401_v39 }
  0xc9   : > { %v2101_v46 = vsub.f32 %v1948_v44, %v398_v45 }
  0xca   : > { %v1602_v24 = vpop.eup %1601  ;;  %v507_v26 = vmul.f32 1.442695, %v2098_v0  ;;  %v505_v44 = vmul.f32 1.442695, %v2105_v51 }
  0xcb   : > { %v1604_v52 = vpop.eup %1603  ;;  %v503_v25 = vmul.f32 1.442695, %v2101_v46  ;;  %v585_v57 = vsel %vm332_vm0, %v1602_v24, 0.0 }
  0xcc   : > { %1607 = vpow2.f32 %v507_v26  ;;  %v579_v42 = vsel %vm332_vm0, %v1604_v52, 0.0  ;;  %586 = vadd.xlane.f32.xlu1 %v585_v57  ;;  %v1606_v43 = vpop.eup %1605 }
  0xcd   : > { %1609 = vpow2.f32 %v503_v25  ;;  %580 = vadd.xlane.f32.xlu2 %v579_v42  ;;  %v582_v20 = vsel %vm332_vm0, %v1606_v43, 0.0 }
  0xce   : > { %574 = vadd.xlane.f32.xlu0 %v573_v14  ;;  %1611 = vpow2.f32 %v505_v44 }
  0xcf   : > { %v413_v58 = vpop.xlane.xlu2 %412  ;;  %v410_v59 = vpop.xlane.xlu1 %409 }
  0xd0   : > { %v2113_v63 = vsub.f32 %v1957_v48, %v413_v58  ;;  %v407_v3 = vpop.xlane.xlu0 %406  ;;  %v2120_v11 = vsub.f32 %v1960_v49, %v410_v59  ;;  %v1757_v49 = vmov 0  }
  0xd1   : > { %v2116_v9 = vsub.f32 %v1963_v50, %v407_v3  ;;  %1562 = vset.pattern.permute.xlu1 %v1757_v49  ;;  %1563 = vset.pattern.permute.xlu2 %v1757_v49 }
  0xd2   : > { %v1608_v30 = vpop.eup %1607  ;;  %v513_v32 = vmul.f32 1.442695, %v2113_v63  ;;  %v511_v50 = vmul.f32 1.442695, %v2120_v11  ;;  %1564 = vset.pattern.permute.xlu0 %v1757_v49  ;;  %v2188_v49 = vld [vmem:[%s2166_s6 + $0x30] sm:$0xff] }
  0xd3   : > { %v1610_v16 = vpop.eup %1609  ;;  %v509_v31 = vmul.f32 1.442695, %v2116_v9  ;;  %v594_v1 = vsel %vm332_vm0, %v1608_v30, 0.0 }
  0xd4   : > { %1613 = vpow2.f32 %v513_v32  ;;  %v588_v48 = vsel %vm332_vm0, %v1610_v16, 0.0  ;;  %595 = vadd.xlane.f32.xlu1 %v594_v1  ;;  %v1612_v19 = vpop.eup %1611 }
  0xd5   : > { %1615 = vpow2.f32 %v509_v31  ;;  %589 = vadd.xlane.f32.xlu2 %v588_v48  ;;  %v2173_v48 = vld [vmem:[%s2166_s6 + $0x8] sm:$0xff] }
  0xd6   : > { %583 = vadd.xlane.f32.xlu0 %v582_v20  ;;  %1617 = vpow2.f32 %v511_v50  ;;  %v2169_v20 = vld [vmem:[%s2166_s6] sm:$0xff] }
  0xd7   : > { %v422_v2 = vpop.xlane.xlu2 %421  ;;  %v419_v28 = vpop.xlane.xlu1 %418  ;;  %v2176_v50 = vld [vmem:[%s2166_s6 + $0x20] sm:$0xff] }
  0xd8   : > { %v2128_v34 = vsub.f32 %v1972_v54, %v422_v2  ;;  %v416_v7 = vpop.xlane.xlu0 %415  ;;  %v2135_v39 = vsub.f32 %v1975_v55, %v419_v28  ;;  %v591_v54 = vsel %vm332_vm0, %v1612_v19, 0.0  ;;  %v2181_v2 = vld [vmem:[%s2166_s6 + $0x10] sm:$0xff]  ;;  %v2185_v28 = vld [vmem:[%s2166_s6 + $0x18] sm:$0xff]  ;;  %v2193_v19 = vld [vmem:[%s2166_s6 + $0x48] sm:$0xff] }
  0xd9   : > { %v2131_v36 = vsub.f32 %v1978_v56, %v416_v7 }
  0xda   : > { %v1614_v38 = vpop.eup %1613  ;;  %v519_v8 = vmul.f32 1.442695, %v2128_v34  ;;  %v517_v56 = vmul.f32 1.442695, %v2135_v39 }
  0xdb   : > { %v1616_v37 = vpop.eup %1615  ;;  %v515_v45 = vmul.f32 1.442695, %v2131_v36  ;;  %v603_v24 = vsel %vm332_vm0, %v1614_v38, 0.0 }
  0xdc   : > { %1619 = vpow2.f32 %v519_v8  ;;  %v597_v26 = vsel %vm332_vm0, %v1616_v37, 0.0  ;;  %604 = vadd.xlane.f32.xlu1 %v603_v24  ;;  %v1618_v25 = vpop.eup %1617  ;;  %v2201_v8 = vld [vmem:[%s2166_s6 + $0x28] sm:$0xff]  ;;  %v2204_v37 = vld [vmem:[%s2166_s6 + $0x40] sm:$0xff] }
  0xdd   : > { %1621 = vpow2.f32 %v515_v45  ;;  %598 = vadd.xlane.f32.xlu2 %v597_v26  ;;  %v600_v43 = vsel %vm332_vm0, %v1618_v25, 0.0  ;;  %v2209_v45 = vld [vmem:[%s2166_s6 + $0x60] sm:$0xff]  ;;  %v2227_v25 = vld [vmem:[%s2166_s6 + $0x78] sm:$0xff] }
  0xde   : > { %592 = vadd.xlane.f32.xlu0 %v591_v54  ;;  %1623 = vpow2.f32 %v517_v56  ;;  %2920 = vst [vmem:[#allocation6_spill] sm:$0xff] %v2209_v45  ;;  %v2219_v56 = vld [vmem:[%s2166_s6 + $0x38] sm:$0xff] }
  0xdf   : > { %v428_v52 = vpop.xlane.xlu1 %427  ;;  %2921 = vst [vmem:[#allocation7_spill] sm:$0xff] %v2219_v56 }
  0xe0   : > { %v425_v55 = vpop.xlane.xlu0 %424  ;;  %v2146_v42 = vsub.f32 %v1987_v60, %v428_v52  ;;  %v2222_v52 = vld [vmem:[%s2166_s6 + $0x58] sm:$0xff]  ;;  %2922 = vst [vmem:[#allocation8_spill] sm:$0xff] %v2227_v25 }
  0xe1   : > { %v2143_v57 = vsub.f32 %v1990_v61, %v425_v55 }
  0xe2   : > { %v1620_v14 = vpop.eup %1619  ;;  %v523_v61 = vmul.f32 1.442695, %v2146_v42 }
  0xe3   : > { %2919 = vst [vmem:[#allocation5_spill] sm:$0xff] %v2143_v57  ;;  %v1622_v44 = vpop.eup %1621  ;;  %v521_v58 = vmul.f32 1.442695, %v2143_v57  ;;  %v612_v59 = vsel %vm332_vm0, %v1620_v14, 0.0  ;;  %v2271_v57 = vld [vmem:[%s2166_s6 + $0x80] sm:$0xff] }
  0xe4   : > { %v606_v3 = vsel %vm332_vm0, %v1622_v44, 0.0  ;;  %613 = vadd.xlane.f32.xlu1 %v612_v59  ;;  %v1624_v30 = vpop.eup %1623  ;;  %v2240_v59 = vld [vmem:[%s2166_s6 + $0x70] sm:$0xff]  ;;  %2930 = vst [vmem:[#allocation16_spill] sm:$0xff] %v2271_v57 }
  0xe5   : > { %1625 = vpow2.f32 %v521_v58  ;;  %607 = vadd.xlane.f32.xlu2 %v606_v3  ;;  %v609_v32 = vsel %vm332_vm0, %v1624_v30, 0.0  ;;  %v2237_v58 = vld [vmem:[%s2166_s6 + $0x50] sm:$0xff]  ;;  %2924 = vst [vmem:[#allocation10_spill] sm:$0xff] %v2240_v59  ;;  %v2253_v30 = vld [vmem:[%s2166_s6 + $0x68] sm:$0xff] }
  0xe6   : > { %601 = vadd.xlane.f32.xlu0 %v600_v43  ;;  %1627 = vpow2.f32 %v523_v61  ;;  %2923 = vst [vmem:[#allocation9_spill] sm:$0xff] %v2237_v58  ;;  %v2245_v43 = vld [vmem:[%s2166_s6 + $0x90] sm:$0xff] }
  0xe7   : > { %2925 = vst [vmem:[#allocation11_spill] sm:$0xff] %v2245_v43 }
  0xe8   : > { %2926 = vst [vmem:[#allocation12_spill] sm:$0xff] %v2253_v30 }
  0xeb   : > { %v1626_v60 = vpop.eup %1625 }
  0xec   : > { %v615_v16 = vsel %vm332_vm0, %v1626_v60, 0.0  ;;  %v1628_v31 = vpop.eup %1627  ;;  %v2256_v60 = vld [vmem:[%s2166_s6 + $0x88] sm:$0xff] }
  0xed   : > { %616 = vadd.xlane.f32.xlu2 %v615_v16  ;;  %v618_v1 = vsel %vm332_vm0, %v1628_v31, 0.0  ;;  %2927 = vst [vmem:[#allocation13_spill] sm:$0xff] %v2256_v60  ;;  %v2263_v16 = vld [vmem:[%s2166_s6 + $0xa8] sm:$0xff] }
  0xee   : > { %610 = vadd.xlane.f32.xlu0 %v609_v32  ;;  %2928 = vst [vmem:[#allocation14_spill] sm:$0xff] %v2263_v16 }
  0xf6   : > { %619 = vadd.xlane.f32.xlu0 %v618_v1 }
  0xfd   : > { %624 = vperm.xlu1 %1562, %v2169_v20  }
 0x105   : > { %627 = vperm.xlu2 %1563, %v2173_v48   ;;  %636 = vperm.xlu1 %1562, %v2176_v50  }
 0x10a   : > { %630 = vperm.xlu0 %1564, %v2181_v2  }
 0x10d   : > { %633 = vperm.xlu2 %1563, %v2185_v28   ;;  %642 = vperm.xlu1 %1562, %v2188_v49  }
 0x10f   : > { %v2195_v7 = vpop.xlane.xlu1 %532 }
 0x110   : > { %v2197_v38 = vpop.xlane.xlu2 %526 }
 0x112   : > { %651 = vperm.xlu0 %1564, %v2193_v19  }
 0x115   : > { %639 = vperm.xlu2 %1563, %v2201_v8   ;;  %648 = vperm.xlu1 %1562, %v2204_v37  }
 0x117   : > { %v2211_v24 = vpop.xlane.xlu1 %541 }
 0x118   : > { %v2213_v54 = vpop.xlane.xlu2 %535 }
 0x119   : > { %v2215_v26 = vpop.xlane.xlu0 %529 }
 0x11a   : > { %660 = vperm.xlu0 %1564, %v2209_v45   ;;  %v2331_v45 = vld [vmem:[%s2166_s6 + $0xe0] sm:$0xff]  ;;  %1629 = vlog2.f32 %v2215_v26 }
 0x11b   : > { %2950 = vst [vmem:[#allocation36_spill] sm:$0xff] %v2331_v45  ;;  %1631 = vlog2.f32 %v2197_v38 }
 0x11c   : > { %1633 = vlog2.f32 %v2211_v24 }
 0x11d   : > { %645 = vperm.xlu2 %1563, %v2219_v56   ;;  %657 = vperm.xlu1 %1562, %v2222_v52   ;;  %1635 = vlog2.f32 %v2213_v54 }
 0x11e   : > { %1637 = vlog2.f32 %v2195_v7 }
 0x11f   : > { %v2233_v44 = vpop.xlane.xlu1 %550 }
 0x120   : > { %v2229_v55 = vpop.xlane.xlu2 %544 }
 0x121   : > { %v2231_v14 = vpop.xlane.xlu0 %538  ;;  %1639 = vlog2.f32 %v2229_v55 }
 0x122   : > { %669 = vperm.xlu0 %1564, %v2227_v25   ;;  %1641 = vlog2.f32 %v2233_v44 }
 0x123   : > { %1643 = vlog2.f32 %v2231_v14 }
 0x125   : > { %654 = vperm.xlu2 %1563, %v2237_v58   ;;  %666 = vperm.xlu1 %1562, %v2240_v59   ;;  %v2292_v59 = vld [vmem:[%s2166_s6 + $0xb8] sm:$0xff] }
 0x126   : > { %2937 = vst [vmem:[#allocation23_spill] sm:$0xff] %v2292_v59 }
 0x127   : > { %v2258_v32 = vpop.xlane.xlu1 %559 }
 0x128   : > { %v2247_v3 = vpop.xlane.xlu2 %553 }
 0x129   : > { %v2249_v61 = vpop.xlane.xlu0 %547  ;;  %1645 = vlog2.f32 %v2247_v3 }
 0x12a   : > { %678 = vperm.xlu0 %1564, %v2245_v43   ;;  %v2274_v43 = vld [vmem:[%s2166_s6 + $0xa0] sm:$0xff]  ;;  %1647 = vlog2.f32 %v2258_v32 }
 0x12b   : > { %2931 = vst [vmem:[#allocation17_spill] sm:$0xff] %v2274_v43  ;;  %1649 = vlog2.f32 %v2249_v61 }
 0x12d   : > { %663 = vperm.xlu2 %1563, %v2253_v30   ;;  %675 = vperm.xlu1 %1562, %v2256_v60   ;;  %v2281_v30 = vld [vmem:[%s2166_s6 + $0xc0] sm:$0xff] }
 0x12e   : > { %2933 = vst [vmem:[#allocation19_spill] sm:$0xff] %v2281_v30 }
 0x12f   : > { %v2276_v25 = vpop.xlane.xlu1 %568 }
 0x130   : > { %v2265_v31 = vpop.xlane.xlu2 %562  ;;  %2932 = vst [vmem:[#allocation18_spill] sm:$0xff] %v2276_v25 }
 0x131   : > { %v2267_v1 = vpop.xlane.xlu0 %556  ;;  %1651 = vlog2.f32 %v2265_v31 }
 0x132   : > { %2929 = vst [vmem:[#allocation15_spill] sm:$0xff] %v2267_v1  ;;  %687 = vperm.xlu0 %1564, %v2263_v16   ;;  %v2289_v16 = vld [vmem:[%s2166_s6 + $0x98] sm:$0xff]  ;;  %v2310_v1 = vld [vmem:[%s2166_s6 + $0xd0] sm:$0xff] }
 0x133   : > { %2936 = vst [vmem:[#allocation22_spill] sm:$0xff] %v2289_v16 }
 0x134   : > { %2943 = vst [vmem:[#allocation29_spill] sm:$0xff] %v2310_v1 }
 0x135   : > { %672 = vperm.xlu2 %1563, %v2271_v57   ;;  %684 = vperm.xlu1 %1562, %v2274_v43   ;;  %v2297_v57 = vld [vmem:[%s2166_s6 + $0xd8] sm:$0xff] }
 0x136   : > { %2938 = vst [vmem:[#allocation24_spill] sm:$0xff] %v2297_v57 }
 0x137   : > { %v2299_v43 = vpop.xlane.xlu1 %577 }
 0x138   : > { %v2283_v60 = vpop.xlane.xlu2 %571  ;;  %2939 = vst [vmem:[#allocation25_spill] sm:$0xff] %v2299_v43 }
 0x139   : > { %2934 = vst [vmem:[#allocation20_spill] sm:$0xff] %v2283_v60  ;;  %v2285_v58 = vpop.xlane.xlu0 %565 }
 0x13a   : > { %2935 = vst [vmem:[#allocation21_spill] sm:$0xff] %v2285_v58  ;;  %696 = vperm.xlu0 %1564, %v2281_v30   ;;  %v2307_v30 = vld [vmem:[%s2166_s6 + $0xb0] sm:$0xff] }
 0x13b   : > { %2942 = vst [vmem:[#allocation28_spill] sm:$0xff] %v2307_v30 }
 0x13d   : > { %681 = vperm.xlu2 %1563, %v2289_v16   ;;  %693 = vperm.xlu1 %1562, %v2292_v59  }
 0x13f   : > { %v2316_v59 = vpop.xlane.xlu1 %586 }
 0x140   : > { %v2301_v60 = vpop.xlane.xlu2 %580  ;;  %2945 = vst [vmem:[#allocation31_spill] sm:$0xff] %v2316_v59 }
 0x141   : > { %2940 = vst [vmem:[#allocation26_spill] sm:$0xff] %v2301_v60  ;;  %v2303_v58 = vpop.xlane.xlu0 %574  ;;  %v2321_v60 = vld [vmem:[%s2166_s6 + $0xc8] sm:$0xff] }
 0x142   : > { %2941 = vst [vmem:[#allocation27_spill] sm:$0xff] %v2303_v58  ;;  %705 = vperm.xlu0 %1564, %v2297_v57   ;;  %v2324_v58 = vld [vmem:[%s2166_s6 + $0xe8] sm:$0xff] }
 0x143   : > { %2947 = vst [vmem:[#allocation33_spill] sm:$0xff] %v2321_v60 }
 0x144   : > { %2948 = vst [vmem:[#allocation34_spill] sm:$0xff] %v2324_v58 }
 0x145   : > { %690 = vperm.xlu2 %1563, %v2307_v30   ;;  %702 = vperm.xlu1 %1562, %v2310_v1  }
 0x147   : > { %v2333_v30 = vpop.xlane.xlu1 %595 }
 0x148   : > { %v2314_v16 = vpop.xlane.xlu2 %589  ;;  %2951 = vst [vmem:[#allocation37_spill] sm:$0xff] %v2333_v30 }
 0x149   : > { %2944 = vst [vmem:[#allocation30_spill] sm:$0xff] %v2314_v16  ;;  %v2318_v43 = vpop.xlane.xlu0 %583 }
 0x14a   : > { %2946 = vst [vmem:[#allocation32_spill] sm:$0xff] %v2318_v43  ;;  %v2341_v43 = vld [vmem:[%s2166_s6 + $0xf8] sm:$0xff] }
 0x14b   : > { %2954 = vst [vmem:[#allocation40_spill] sm:$0xff] %v2341_v43 }
 0x14d   : > { %699 = vperm.xlu2 %1563, %v2321_v60   ;;  %711 = vperm.xlu1 %1562, %v2324_v58  }
 0x14f   : > { %v2343_v59 = vpop.xlane.xlu1 %604 }
 0x150   : > { %v2328_v57 = vpop.xlane.xlu2 %598  ;;  %2955 = vst [vmem:[#allocation41_spill] sm:$0xff] %v2343_v59 }
 0x151   : > { %2949 = vst [vmem:[#allocation35_spill] sm:$0xff] %v2328_v57  ;;  %v2335_v1 = vpop.xlane.xlu0 %592  ;;  %v2915_v57 = vlaneseq }
 0x152   : > { %2952 = vst [vmem:[#allocation38_spill] sm:$0xff] %v2335_v1 }
 0x153   : > { %v2351_v56 = vand.u32 127, %v2915_v57 }
 0x155   : > { %708 = vperm.xlu2 %1563, %v2331_v45  }
 0x157   : > { %v2353_v30 = vpop.xlane.xlu1 %613 }
 0x158   : > { %v2338_v16 = vpop.xlane.xlu2 %607  ;;  %2958 = vst [vmem:[#allocation44_spill] sm:$0xff] %v2353_v30 }
 0x159   : > { %2953 = vst [vmem:[#allocation39_spill] sm:$0xff] %v2338_v16  ;;  %v2346_v60 = vpop.xlane.xlu0 %601 }
 0x15a   : > { %2956 = vst [vmem:[#allocation42_spill] sm:$0xff] %v2346_v60 }
 0x15d   : > { %717 = vperm.xlu2 %1563, %v2341_v43  }
 0x160   : > { %v2348_v58 = vpop.xlane.xlu2 %616 }
 0x161   : > { %2957 = vst [vmem:[#allocation43_spill] sm:$0xff] %v2348_v58  ;;  %v2355_v1 = vpop.xlane.xlu0 %610 }
 0x168   : > { %v628_v45 = vpop.permute.xlu2 %627 }
 0x169   : > { %vm720_vm1 = vcmp.eq.s32.totalorder %v2351_v56, %v628_v45  ;;  %v2361_v60 = vpop.xlane.xlu0 %619 }
 0x16a   : > { %v752_v16 = vsel %vm720_vm1, %v2011_v23, 0.0  ;;  %2959 = vst [vmem:[#allocation45_spill] sm:$0xff] %v2361_v60 }
 0x16b   : > { %v786_v59 = vsel %vm332_vm0, %v752_v16, 0.0 }
 0x16c   : > { %787 = vadd.xlane.f32.xlu0 %v786_v59 }
 0x16f   : > { %v625_v43 = vpop.permute.xlu1 %624 }
 0x170   : > { %vm719_vm2 = vcmp.eq.s32.totalorder %v2351_v56, %v625_v43  ;;  %v634_v58 = vpop.permute.xlu2 %633 }
 0x171   : > { %v751_v57 = vsel %vm719_vm2, %v2000_v10, 0.0  ;;  %vm722_vm3 = vcmp.eq.s32.totalorder %v2351_v56, %v634_v58 }
 0x172   : > { %v783_v30 = vsel %vm332_vm0, %v751_v57, 0.0  ;;  %v754_v43 = vsel %vm722_vm3, %v2008_v22, 0.0 }
 0x173   : > { %v792_v60 = vsel %vm332_vm0, %v754_v43, 0.0 }
 0x177   : > { %v637_v25 = vpop.permute.xlu1 %636  ;;  %784 = vadd.xlane.f32.xlu1 %v783_v30 }
 0x178   : > { %v640_v45 = vpop.permute.xlu2 %639  ;;  %vm723_vm7 = vcmp.eq.s32.totalorder %v2351_v56, %v637_v25 }
 0x179   : > { %vm724_vm4 = vcmp.eq.s32.totalorder %v2351_v56, %v640_v45 }
 0x17a   : > { %v756_v23 = vsel %vm724_vm4, %v2005_v21, 0.0 }
 0x17b   : > { %v798_v16 = vsel %vm332_vm0, %v756_v23, 0.0 }
 0x17c   : > { %v631_v59 = vpop.permute.xlu0 %630  ;;  %799 = vadd.xlane.f32.xlu0 %v798_v16 }
 0x17d   : > { %vm721_vm5 = vcmp.eq.s32.totalorder %v2351_v56, %v631_v59 }
 0x17e   : > { %v753_v58 = vsel %vm721_vm5, %v1997_v5, 0.0 }
 0x17f   : > { %v643_v10 = vpop.permute.xlu1 %642  ;;  %793 = vadd.xlane.f32.xlu1 %v792_v60  ;;  %v789_v45 = vsel %vm332_vm0, %v753_v58, 0.0 }
 0x180   : > { %vm725_vm6 = vcmp.eq.s32.totalorder %v2351_v56, %v643_v10  ;;  %v646_v57 = vpop.permute.xlu2 %645 }
 0x181   : > { %v757_v21 = vsel %vm725_vm6, %v2026_v41, 0.0  ;;  %v755_v41 = vsel %vm723_vm7, %v2016_v29, 0.0  ;;  %vm726_vm10 = vcmp.eq.s32.totalorder %v2351_v56, %v646_v57 }
 0x182   : > { %v801_v22 = vsel %vm332_vm0, %v757_v21, 0.0  ;;  %v795_v10 = vsel %vm332_vm0, %v755_v41, 0.0 }
 0x184   : > { %v652_v30 = vpop.permute.xlu0 %651 }
 0x185   : > { %vm728_vm8 = vcmp.eq.s32.totalorder %v2351_v56, %v652_v30 }
 0x186   : > { %790 = vadd.xlane.f32.xlu2 %v789_v45  ;;  %v760_v43 = vsel %vm728_vm8, %v2041_v4, 0.0  ;;  %v758_v4 = vsel %vm726_vm10, %v2030_v47, 0.0 }
 0x187   : > { %v649_v23 = vpop.permute.xlu1 %648  ;;  %802 = vadd.xlane.f32.xlu1 %v801_v22  ;;  %v810_v25 = vsel %vm332_vm0, %v760_v43, 0.0  ;;  %v804_v22 = vsel %vm332_vm0, %v758_v4, 0.0 }
 0x188   : > { %vm727_vm9 = vcmp.eq.s32.totalorder %v2351_v56, %v649_v23  ;;  %v655_v60 = vpop.permute.xlu2 %654 }
 0x189   : > { %v759_v59 = vsel %vm727_vm9, %v2023_v40, 0.0  ;;  %vm729_vm13 = vcmp.eq.s32.totalorder %v2351_v56, %v655_v60 }
 0x18a   : > { %v807_v5 = vsel %vm332_vm0, %v759_v59, 0.0 }
 0x18b   : > { %808 = vadd.xlane.f32.xlu0 %v807_v5 }
 0x18c   : > { %v661_v16 = vpop.permute.xlu0 %660 }
 0x18d   : > { %vm731_vm11 = vcmp.eq.s32.totalorder %v2351_v56, %v661_v16 }
 0x18e   : > { %796 = vadd.xlane.f32.xlu2 %v795_v10  ;;  %v763_v45 = vsel %vm731_vm11, %v2056_v6, 0.0  ;;  %v761_v6 = vsel %vm729_vm13, %v2045_v15, 0.0 }
 0x18f   : > { %v658_v58 = vpop.permute.xlu1 %657  ;;  %811 = vadd.xlane.f32.xlu1 %v810_v25  ;;  %v819_v57 = vsel %vm332_vm0, %v763_v45, 0.0  ;;  %v813_v16 = vsel %vm332_vm0, %v761_v6, 0.0 }
 0x190   : > { %vm730_vm12 = vcmp.eq.s32.totalorder %v2351_v56, %v658_v58  ;;  %v664_v40 = vpop.permute.xlu2 %663 }
 0x191   : > { %v762_v29 = vsel %vm730_vm12, %v2038_v62, 0.0  ;;  %vm732_vm1 = vcmp.eq.s32.totalorder %v2351_v56, %v664_v40 }
 0x192   : > { %v816_v30 = vsel %vm332_vm0, %v762_v29, 0.0  ;;  %v764_v10 = vsel %vm732_vm1, %v2060_v35, 0.0 }
 0x193   : > { %817 = vadd.xlane.f32.xlu0 %v816_v30  ;;  %v822_v29 = vsel %vm332_vm0, %v764_v10, 0.0 }
 0x194   : > { %v670_v21 = vpop.permute.xlu0 %669 }
 0x195   : > { %vm734_vm14 = vcmp.eq.s32.totalorder %v2351_v56, %v670_v21 }
 0x196   : > { %805 = vadd.xlane.f32.xlu2 %v804_v22  ;;  %v766_v41 = vsel %vm734_vm14, %v2071_v12, 0.0 }
 0x197   : > { %v667_v23 = vpop.permute.xlu1 %666  ;;  %820 = vadd.xlane.f32.xlu1 %v819_v57  ;;  %v828_v60 = vsel %vm332_vm0, %v766_v41, 0.0 }
 0x198   : > { %vm733_vm15 = vcmp.eq.s32.totalorder %v2351_v56, %v667_v23  ;;  %v673_v47 = vpop.permute.xlu2 %672 }
 0x199   : > { %v765_v62 = vsel %vm733_vm15, %v2053_v33, 0.0  ;;  %vm735_vm4 = vcmp.eq.s32.totalorder %v2351_v56, %v673_v47 }
 0x19a   : > { %v825_v59 = vsel %vm332_vm0, %v765_v62, 0.0 }
 0x19b   : > { %826 = vadd.xlane.f32.xlu0 %v825_v59 }
 0x19c   : > { %v679_v5 = vpop.permute.xlu0 %678 }
 0x19d   : > { %vm737_vm2 = vcmp.eq.s32.totalorder %v2351_v56, %v679_v5 }
 0x19e   : > { %814 = vadd.xlane.f32.xlu2 %v813_v16  ;;  %v769_v25 = vsel %vm737_vm2, %v2086_v18, 0.0  ;;  %v767_v18 = vsel %vm735_vm4, %v2075_v13, 0.0  ;;  %vm880_vm2 = vcmp.ne.s32.totalorder %v2173_v48, 4294967196 }
 0x19f   : > { %v676_v43 = vpop.permute.xlu1 %675  ;;  %829 = vadd.xlane.f32.xlu1 %v828_v60  ;;  %v837_v40 = vsel %vm332_vm0, %v769_v25, 0.0  ;;  %v831_v45 = vsel %vm332_vm0, %v767_v18, 0.0  ;;  %v300_v18 = vld [vmem:[%s2471_s9] sm:$0xff] }
 0x1a0   : > { %vm736_vm3 = vcmp.eq.s32.totalorder %v2351_v56, %v676_v43  ;;  %v682_v58 = vpop.permute.xlu2 %681 }
 0x1a1   : > { %v768_v33 = vsel %vm736_vm3, %v2068_v53, 0.0  ;;  %vm738_vm7 = vcmp.eq.s32.totalorder %v2351_v56, %v682_v58  ;;  %vm912_vm3 = vcmp.ge.s32.totalorder %v2173_v48, 0 }
 0x1a2   : > { %v834_v15 = vsel %vm332_vm0, %v768_v33, 0.0  ;;  %vm944_vm4 = vmand %vm880_vm2, %vm912_vm3  ;;  %vm917_vm2 = vcmp.ge.s32.totalorder %v2188_v49, 0 }
 0x1a3   : > { %835 = vadd.xlane.f32.xlu0 %v834_v15 }
 0x1a4   : > { %v688_v12 = vpop.permute.xlu0 %687 }
 0x1a5   : > { %vm740_vm5 = vcmp.eq.s32.totalorder %v2351_v56, %v688_v12 }
 0x1a6   : > { %823 = vadd.xlane.f32.xlu2 %v822_v29  ;;  %v772_v21 = vsel %vm740_vm5, %v2101_v46, 0.0  ;;  %v770_v46 = vsel %vm738_vm7, %v2090_v27, 0.0  ;;  %v2452_v29 = vld [vmem:[%s2166_s6 + $0xf0] sm:$0xff]  ;;  %vm879_vm5 = vcmp.ne.s32.totalorder %v2169_v20, 4294967196 }
 0x1a7   : > { %v685_v30 = vpop.permute.xlu1 %684  ;;  %838 = vadd.xlane.f32.xlu1 %v837_v40  ;;  %v846_v57 = vsel %vm332_vm0, %v772_v21, 0.0  ;;  %v840_v59 = vsel %vm332_vm0, %v770_v46, 0.0  ;;  %v1630_v40 = vpop.eup %1629 }
 0x1a8   : > { %vm739_vm6 = vcmp.eq.s32.totalorder %v2351_v56, %v685_v30  ;;  %v691_v22 = vpop.permute.xlu2 %690  ;;  %v1632_v26 = vpop.eup %1631 }
 0x1a9   : > { %v771_v35 = vsel %vm739_vm6, %v2083_v17, 0.0  ;;  %vm741_vm10 = vcmp.eq.s32.totalorder %v2351_v56, %v691_v22  ;;  %vm911_vm6 = vcmp.ge.s32.totalorder %v2169_v20, 0  ;;  %v1634_v38 = vpop.eup %1633 }
 0x1aa   : > { %v843_v53 = vsel %vm332_vm0, %v771_v35, 0.0  ;;  %vm943_vm7 = vmand %vm879_vm5, %vm911_vm6  ;;  %v1636_v54 = vpop.eup %1635  ;;  %vm887_vm5 = vcmp.ne.s32.totalorder %v2204_v37, 4294967196  ;;  %vm919_vm6 = vcmp.ge.s32.totalorder %v2204_v37, 0 }
 0x1ab   : > { %844 = vadd.xlane.f32.xlu0 %v843_v53  ;;  %v976_v53 = vmul.f32 0.6931472, %v1632_v26  ;;  %v1638_v46 = vpop.eup %1637  ;;  %v2963_v26 = vld [vmem:[#allocation15_spill] sm:$0xff] }
 0x1ac   : > { %v697_v4 = vpop.permute.xlu0 %696  ;;  %v980_v55 = vmul.f32 0.6931472, %v1638_v46 }
 0x1ad   : > { %vm743_vm8 = vcmp.eq.s32.totalorder %v2351_v56, %v697_v4  ;;  %v986_v4 = vmul.f32 0.6931472, %v1634_v38  ;;  %v2964_v38 = vld [vmem:[#allocation20_spill] sm:$0xff] }
 0x1ae   : > { %832 = vadd.xlane.f32.xlu2 %v831_v45  ;;  %v775_v62 = vsel %vm743_vm8, %v2116_v9, 0.0  ;;  %v773_v9 = vsel %vm741_vm10, %v2105_v51, 0.0  ;;  %vm884_vm8 = vcmp.ne.s32.totalorder %v2201_v8, 4294967196  ;;  %vm882_vm10 = vcmp.ne.s32.totalorder %v2185_v28, 4294967196 }
 0x1af   : > { %v694_v23 = vpop.permute.xlu1 %693  ;;  %847 = vadd.xlane.f32.xlu1 %v846_v57  ;;  %v855_v6 = vsel %vm332_vm0, %v775_v62, 0.0  ;;  %v849_v60 = vsel %vm332_vm0, %v773_v9, 0.0  ;;  %v982_v57 = vmul.f32 0.6931472, %v1636_v54 }
 0x1b0   : > { %vm742_vm9 = vcmp.eq.s32.totalorder %v2351_v56, %v694_v23  ;;  %v700_v41 = vpop.permute.xlu2 %699 }
 0x1b1   : > { %v774_v13 = vsel %vm742_vm9, %v2098_v0, 0.0  ;;  %vm744_vm13 = vcmp.eq.s32.totalorder %v2351_v56, %v700_v41  ;;  %vm916_vm9 = vcmp.ge.s32.totalorder %v2201_v8, 0  ;;  %v305_v41 = vld [vmem:[%s2471_s9 + $0x28] sm:$0xff] }
 0x1b2   : > { %v852_v17 = vsel %vm332_vm0, %v774_v13, 0.0  ;;  %v776_v10 = vsel %vm744_vm13, %v2120_v11, 0.0  ;;  %v303_v13 = vld [vmem:[%s2471_s9 + $0x18] sm:$0xff] }
 0x1b3   : > { %853 = vadd.xlane.f32.xlu0 %v852_v17 }
 0x1b4   : > { %v706_v47 = vpop.permute.xlu0 %705 }
 0x1b5   : > { %vm746_vm11 = vcmp.eq.s32.totalorder %v2351_v56, %v706_v47 }
 0x1b6   : > { %841 = vadd.xlane.f32.xlu2 %v840_v59  ;;  %v778_v16 = vsel %vm746_vm11, %v2131_v36, 0.0  ;;  %v858_v36 = vsel %vm332_vm0, %v776_v10, 0.0  ;;  %vm914_vm11 = vcmp.ge.s32.totalorder %v2185_v28, 0  ;;  %v1640_v28 = vpop.eup %1639  ;;  %v306_v10 = vld [vmem:[%s2471_s9 + $0x30] sm:$0xff] }
 0x1b7   : > { %v703_v5 = vpop.permute.xlu1 %702  ;;  %856 = vadd.xlane.f32.xlu1 %v855_v6  ;;  %v864_v43 = vsel %vm332_vm0, %v778_v16, 0.0  ;;  %vm946_vm13 = vmand %vm882_vm10, %vm914_vm11  ;;  %v988_v44 = vmul.f32 0.6931472, %v1640_v28  ;;  %v1642_v59 = vpop.eup %1641  ;;  %v302_v6 = vld [vmem:[%s2471_s9 + $0x10] sm:$0xff]  ;;  %vm888_vm10 = vcmp.ne.s32.totalorder %v2193_v19, 4294967196  ;;  %vm920_vm11 = vcmp.ge.s32.totalorder %v2193_v19, 0 }
 0x1b8   : > { %vm745_vm12 = vcmp.eq.s32.totalorder %v2351_v56, %v703_v5  ;;  %v709_v15 = vpop.permute.xlu2 %708  ;;  %v992_v3 = vmul.f32 0.6931472, %v1642_v59  ;;  %v2968_v59 = vld [vmem:[#allocation8_spill] sm:$0xff] }
 0x1b9   : > { %v777_v27 = vsel %vm745_vm12, %v2113_v63, 0.0  ;;  %vm747_vm15 = vcmp.eq.s32.totalorder %v2351_v56, %v709_v15  ;;  %vm948_vm12 = vmand %vm884_vm8, %vm916_vm9  ;;  %vm915_vm8 = vcmp.ge.s32.totalorder %v2176_v50, 0 }
 0x1ba   : > { %v861_v0 = vsel %vm332_vm0, %v777_v27, 0.0  ;;  %v779_v12 = vsel %vm747_vm15, %v2135_v39, 0.0  ;;  %v978_v39 = vmul.f32 0.6931472, %v1630_v40  ;;  %vm913_vm15 = vcmp.ge.s32.totalorder %v2181_v2, 0  ;;  %v1644_v27 = vpop.eup %1643  ;;  %vm951_vm9 = vmand %vm887_vm5, %vm919_vm6 }
 0x1bb   : > { %862 = vadd.xlane.f32.xlu0 %v861_v0  ;;  %v867_v58 = vsel %vm332_vm0, %v779_v12, 0.0  ;;  %v1646_v16 = vpop.eup %1645  ;;  %v984_v32 = vmul.f32 0.6931472, %v1644_v27  ;;  %v308_v12 = vld [vmem:[%s2471_s9 + $0x40] sm:$0xff] }
 0x1be   : > { %850 = vadd.xlane.f32.xlu2 %v849_v60 }
 0x1bf   : > { %v712_v33 = vpop.permute.xlu1 %711  ;;  %865 = vadd.xlane.f32.xlu1 %v864_v43 }
 0x1c0   : > { %vm748_vm14 = vcmp.eq.s32.totalorder %v2351_v56, %v712_v33  ;;  %v718_v25 = vpop.permute.xlu2 %717  ;;  %v994_v33 = vmul.f32 0.6931472, %v1646_v16 }
 0x1c1   : > { %v780_v63 = vsel %vm748_vm14, %v2128_v34, 0.0  ;;  %vm750_vm1 = vcmp.eq.s32.totalorder %v2351_v56, %v718_v25  ;;  %vm881_vm14 = vcmp.ne.s32.totalorder %v2181_v2, 4294967196  ;;  %v2960_v25 = vld [vmem:[#allocation18_spill] sm:$0xff] }
 0x1c2   : > { %v870_v51 = vsel %vm332_vm0, %v780_v63, 0.0  ;;  %v782_v34 = vsel %vm750_vm1, %v2146_v42, 0.0  ;;  %vm885_vm1 = vcmp.ne.s32.totalorder %v2188_v49, 4294967196  ;;  %vm945_vm3 = vmand %vm881_vm14, %vm913_vm15  ;;  %vm890_vm14 = vcmp.ne.s32.totalorder %v2222_v52, 4294967196 }
 0x1c3   : > { %871 = vadd.xlane.f32.xlu0 %v870_v51  ;;  %v876_v11 = vsel %vm332_vm0, %v782_v34, 0.0  ;;  %v1648_v51 = vpop.eup %1647  ;;  %vm922_vm15 = vcmp.ge.s32.totalorder %v2222_v52, 0  ;;  %1653 = vlog2.f32 %v2960_v25  ;;  %v2962_v52 = vld [vmem:[#allocation6_spill] sm:$0xff]  ;;  %v2974_v25 = vld [vmem:[#allocation11_spill] sm:$0xff] }
 0x1c4   : > { %v998_v34 = vmul.f32 0.6931472, %v1648_v51  ;;  %vm923_vm5 = vcmp.ge.s32.totalorder %v2962_v52, 0  ;;  %1655 = vlog2.f32 %v2963_v26 }
 0x1c5   : > { %1657 = vlog2.f32 %v2964_v38  ;;  %v317_v38 = vld [vmem:[%s2471_s9 + $0x88] sm:$0xff] }
 0x1c6   : > { %859 = vadd.xlane.f32.xlu2 %v858_v36 }
 0x1ce   : > { %868 = vadd.xlane.f32.xlu2 %v867_v58 }
 0x1d6   : > { %877 = vadd.xlane.f32.xlu2 %v876_v11 }
 0x1d7   : > { %714 = vperm.xlu0 %1564, %v2452_v29  }
 0x1df   : > { %v788_v30 = vpop.xlane.xlu0 %787 }
 0x1e0   : > { %v1040_v42 = vsub.f32 %v978_v39, %v788_v30  ;;  %v2961_v30 = vld [vmem:[#allocation7_spill] sm:$0xff] }
 0x1e2   : > { %v2460_v35 = vsel %vm944_vm4, %v1040_v42, 0.0  ;;  %vm949_vm4 = vmand %vm885_vm1, %vm917_vm2  ;;  %vm886_vm1 = vcmp.ne.s32.totalorder %v2961_v30, 4294967196  ;;  %vm918_vm2 = vcmp.ge.s32.totalorder %v2961_v30, 0 }
 0x1e3   : > { %vm950_vm6 = vmand %vm886_vm1, %vm918_vm2 }
 0x1ea   : > { %v785_v48 = vpop.xlane.xlu1 %784 }
 0x1eb   : > { %v1039_v24 = vsub.f32 %v976_v53, %v785_v48 }
 0x1ed   : > { %v1071_v20 = vsel %vm943_vm7, %v1039_v24, 0.0  ;;  %vm883_vm7 = vcmp.ne.s32.totalorder %v2176_v50, 4294967196  ;;  %v1650_v50 = vpop.eup %1649 }
 0x1ee   : > { %v1103_v21 = vmul.f32 %v1071_v20, %v300_v18  ;;  %v1652_v39 = vpop.eup %1651  ;;  %v990_v48 = vmul.f32 0.6931472, %v1650_v50  ;;  %v2975_v50 = vld [vmem:[#allocation27_spill] sm:$0xff] }
 0x1ef   : > { %v800_v45 = vpop.xlane.xlu0 %799  ;;  %v1000_v18 = vmul.f32 0.6931472, %v1652_v39  ;;  %v1654_v54 = vpop.eup %1653 }
 0x1f0   : > { %v1044_v22 = vsub.f32 %v986_v4, %v800_v45  ;;  %1170 = vperm.xlu0 %1564, %v1103_v21   ;;  %v309_v4 = vld [vmem:[%s2471_s9 + $0x48] sm:$0xff]  ;;  %v1004_v46 = vmul.f32 0.6931472, %v1654_v54 }
 0x1f2   : > { %v1076_v23 = vsel %vm948_vm12, %v1044_v22, 0.0  ;;  %v794_v8 = vpop.xlane.xlu1 %793  ;;  %vm947_vm12 = vmand %vm883_vm7, %vm915_vm8  ;;  %v2965_v22 = vld [vmem:[#allocation10_spill] sm:$0xff] }
 0x1f3   : > { %v1042_v17 = vsub.f32 %v982_v57, %v794_v8  ;;  %v1108_v60 = vmul.f32 %v1076_v23, %v305_v41  ;;  %vm893_vm8 = vcmp.ne.s32.totalorder %v2965_v22, 4294967196  ;;  %v311_v57 = vld [vmem:[%s2471_s9 + $0x58] sm:$0xff]  ;;  %v2966_v8 = vld [vmem:[#allocation25_spill] sm:$0xff]  ;;  %v2970_v41 = vld [vmem:[#allocation26_spill] sm:$0xff] }
 0x1f4   : > { %1659 = vlog2.f32 %v2966_v8 }
 0x1f5   : > { %v1074_v62 = vsel %vm946_vm13, %v1042_v17, 0.0  ;;  %vm952_vm13 = vmand %vm888_vm10, %vm920_vm11  ;;  %v1656_v17 = vpop.eup %1655 }
 0x1f6   : > { %v1106_v7 = vmul.f32 %v1074_v62, %v303_v13 }
 0x1f8   : > { %1185 = vperm.xlu0 %1564, %v1106_v7   ;;  %v1658_v7 = vpop.eup %1657 }
 0x1f9   : > { %v791_v47 = vpop.xlane.xlu2 %790 }
 0x1fa   : > { %v1041_v5 = vsub.f32 %v980_v55, %v791_v47  ;;  %v803_v2 = vpop.xlane.xlu1 %802  ;;  %v2967_v55 = vld [vmem:[#allocation9_spill] sm:$0xff] }
 0x1fb   : > { %v1045_v49 = vsub.f32 %v988_v44, %v803_v2  ;;  %vm889_vm10 = vcmp.ne.s32.totalorder %v2967_v55, 4294967196  ;;  %vm921_vm11 = vcmp.ge.s32.totalorder %v2967_v55, 0  ;;  %v996_v2 = vmul.f32 0.6931472, %v1656_v17  ;;  %v2980_v17 = vld [vmem:[#allocation14_spill] sm:$0xff] }
 0x1fc   : > { %v1073_v14 = vsel %vm945_vm3, %v1041_v5, 0.0  ;;  %vm954_vm3 = vmand %vm890_vm14, %vm922_vm15  ;;  %vm926_vm14 = vcmp.ge.s32.totalorder %v2968_v59, 0 }
 0x1fd   : > { %v1105_v0 = vmul.f32 %v1073_v14, %v302_v6  ;;  %v1077_v9 = vsel %vm949_vm4, %v1045_v49, 0.0  ;;  %vm891_vm4 = vcmp.ne.s32.totalorder %v2962_v52, 4294967196  ;;  %v2969_v6 = vld [vmem:[#allocation21_spill] sm:$0xff]  ;;  %v1006_v49 = vmul.f32 0.6931472, %v1658_v7  ;;  %vm953_vm15 = vmand %vm889_vm10, %vm921_vm11  ;;  %v315_v52 = vld [vmem:[%s2471_s9 + $0x78] sm:$0xff] }
 0x1fe   : > { %v809_v43 = vpop.xlane.xlu0 %808  ;;  %v1109_v11 = vmul.f32 %v1077_v9, %v306_v10  ;;  %vm955_vm7 = vmand %vm891_vm4, %vm923_vm5  ;;  %1661 = vlog2.f32 %v2969_v6  ;;  %v2982_v7 = vld [vmem:[#allocation35_spill] sm:$0xff] }
 0x1ff   : > { %1180 = vperm.xlu2 %1563, %v1105_v0   ;;  %v1047_v37 = vsub.f32 %v992_v3, %v809_v43  ;;  %1663 = vlog2.f32 %v2970_v41  ;;  %v1660_v3 = vpop.eup %1659  ;;  %v312_v0 = vld [vmem:[%s2471_s9 + $0x60] sm:$0xff]  ;;  %v314_v43 = vld [vmem:[%s2471_s9 + $0x70] sm:$0xff] }
 0x200   : > { %1195 = vperm.xlu0 %1564, %v1108_v60   ;;  %v2971_v60 = vld [vmem:[#allocation13_spill] sm:$0xff]  ;;  %v318_v6 = vld [vmem:[%s2471_s9 + $0x90] sm:$0xff] }
 0x201   : > { %v1079_v63 = vsel %vm951_vm9, %v1047_v37, 0.0  ;;  %v797_v15 = vpop.xlane.xlu2 %796  ;;  %vm925_vm9 = vcmp.ge.s32.totalorder %v2965_v22, 0  ;;  %vm896_vm2 = vcmp.ne.s32.totalorder %v2971_v60, 4294967196  ;;  %v2983_v41 = vld [vmem:[#allocation23_spill] sm:$0xff] }
 0x202   : > { %v1043_v36 = vsub.f32 %v984_v32, %v797_v15  ;;  %v812_v61 = vpop.xlane.xlu1 %811  ;;  %v1111_v19 = vmul.f32 %v1079_v63, %v308_v12  ;;  %v2972_v32 = vld [vmem:[#allocation31_spill] sm:$0xff]  ;;  %v1010_v15 = vmul.f32 0.6931472, %v1660_v3 }
 0x203   : > { %v1048_v31 = vsub.f32 %v994_v33, %v812_v61  ;;  %1665 = vlog2.f32 %v2972_v32  ;;  %v2973_v61 = vld [vmem:[#allocation12_spill] sm:$0xff] }
 0x204   : > { %v2508_v58 = vsel %vm947_vm12, %v1043_v36, 0.0  ;;  %vm957_vm12 = vmand %vm893_vm8, %vm925_vm9  ;;  %v1662_v63 = vpop.eup %1661  ;;  %vm892_vm4 = vcmp.ne.s32.totalorder %v2973_v61, 4294967196  ;;  %vm924_vm5 = vcmp.ge.s32.totalorder %v2973_v61, 0  ;;  %vm929_vm8 = vcmp.ge.s32.totalorder %v2974_v25, 0  ;;  %v2988_v61 = vld [vmem:[#allocation39_spill] sm:$0xff] }
 0x205   : > { %v1080_v40 = vsel %vm952_vm13, %v1048_v31, 0.0  ;;  %vm894_vm13 = vcmp.ne.s32.totalorder %v2968_v59, 4294967196  ;;  %v1664_v36 = vpop.eup %1663  ;;  %1667 = vlog2.f32 %v2975_v50  ;;  %vm956_vm9 = vmand %vm892_vm4, %vm924_vm5  ;;  %vm902_vm5 = vcmp.ne.s32.totalorder %v2983_v41, 4294967196 }
 0x206   : > { %v818_v42 = vpop.xlane.xlu0 %817  ;;  %v1112_v62 = vmul.f32 %v1080_v40, %v309_v4  ;;  %vm958_vm1 = vmand %vm894_vm13, %vm926_vm14  ;;  %v2976_v40 = vld [vmem:[#allocation30_spill] sm:$0xff]  ;;  %v1012_v39 = vmul.f32 0.6931472, %v1664_v36 }
 0x207   : > { %1200 = vperm.xlu2 %1563, %v1109_v11   ;;  %v1050_v53 = vsub.f32 %v998_v34, %v818_v42  ;;  %v1002_v11 = vmul.f32 0.6931472, %v1662_v63  ;;  %1669 = vlog2.f32 %v2976_v40 }
 0x208   : > { %1210 = vperm.xlu0 %1564, %v1111_v19  }
 0x209   : > { %v1082_v24 = vsel %vm954_vm3, %v1050_v53, 0.0  ;;  %v806_v20 = vpop.xlane.xlu2 %805  ;;  %vm928_vm3 = vcmp.ge.s32.totalorder %v2971_v60, 0  ;;  %v1666_v42 = vpop.eup %1665 }
 0x20a   : > { %v1046_v21 = vsub.f32 %v990_v48, %v806_v20  ;;  %v821_v45 = vpop.xlane.xlu1 %820  ;;  %v1114_v44 = vmul.f32 %v1082_v24, %v311_v57  ;;  %v2977_v48 = vld [vmem:[#allocation17_spill] sm:$0xff]  ;;  %v1016_v4 = vmul.f32 0.6931472, %v1666_v42  ;;  %v2979_v57 = vld [vmem:[#allocation16_spill] sm:$0xff] }
 0x20b   : > { %v1051_v23 = vsub.f32 %v1000_v18, %v821_v45  ;;  %vm899_vm11 = vcmp.ne.s32.totalorder %v2977_v48, 4294967196  ;;  %v2978_v24 = vld [vmem:[#allocation37_spill] sm:$0xff]  ;;  %v1668_v54 = vpop.eup %1667  ;;  %vm895_vm13 = vcmp.ne.s32.totalorder %v2979_v57, 4294967196  ;;  %vm927_vm14 = vcmp.ge.s32.totalorder %v2979_v57, 0  ;;  %v2990_v42 = vld [vmem:[#allocation44_spill] sm:$0xff] }
 0x20c   : > { %v2525_v13 = vsel %vm950_vm6, %v1046_v21, 0.0  ;;  %vm960_vm6 = vmand %vm896_vm2, %vm928_vm3  ;;  %1671 = vlog2.f32 %v2978_v24  ;;  %vm932_vm2 = vcmp.ge.s32.totalorder %v2980_v17, 0  ;;  %v2991_v24 = vld [vmem:[#allocation28_spill] sm:$0xff] }
 0x20d   : > { %v1083_v28 = vsel %vm955_vm7, %v1051_v23, 0.0  ;;  %vm897_vm7 = vcmp.ne.s32.totalorder %v2974_v25, 4294967196  ;;  %v1670_v22 = vpop.eup %1669  ;;  %vm959_vm3 = vmand %vm895_vm13, %vm927_vm14 }
 0x20e   : > { %v827_v47 = vpop.xlane.xlu0 %826  ;;  %v1115_v51 = vmul.f32 %v1083_v28, %v312_v0  ;;  %vm961_vm10 = vmand %vm897_vm7, %vm929_vm8  ;;  %v1008_v28 = vmul.f32 0.6931472, %v1668_v54  ;;  %v1018_v55 = vmul.f32 0.6931472, %v1670_v22 }
 0x20f   : > { %1215 = vperm.xlu2 %1563, %v1112_v62   ;;  %v1053_v5 = vsub.f32 %v1004_v46, %v827_v47  ;;  %v2981_v46 = vld [vmem:[#allocation32_spill] sm:$0xff] }
 0x210   : > { %1225 = vperm.xlu0 %1564, %v1114_v44   ;;  %1673 = vlog2.f32 %v2981_v46 }
 0x211   : > { %v1085_v14 = vsel %vm957_vm12, %v1053_v5, 0.0  ;;  %v815_v27 = vpop.xlane.xlu2 %814  ;;  %vm931_vm12 = vcmp.ge.s32.totalorder %v2977_v48, 0  ;;  %1675 = vlog2.f32 %v2982_v7 }
 0x212   : > { %v1049_v9 = vsub.f32 %v996_v2, %v815_v27  ;;  %v830_v16 = vpop.xlane.xlu1 %829  ;;  %v1117_v12 = vmul.f32 %v1085_v14, %v314_v43  ;;  %v1672_v59 = vpop.eup %1671  ;;  %v2984_v27 = vld [vmem:[#allocation41_spill] sm:$0xff] }
 0x213   : > { %v1054_v37 = vsub.f32 %v1006_v49, %v830_v16  ;;  %v320_v49 = vld [vmem:[%s2471_s9 + $0xa0] sm:$0xff]  ;;  %1677 = vlog2.f32 %v2984_v27 }
 0x214   : > { %v2542_v33 = vsel %vm953_vm15, %v1049_v9, 0.0  ;;  %vm963_vm15 = vmand %vm899_vm11, %vm931_vm12  ;;  %v1022_v9 = vmul.f32 0.6931472, %v1672_v59 }
 0x215   : > { %v1086_v10 = vsel %vm958_vm1, %v1054_v37, 0.0  ;;  %vm900_vm1 = vcmp.ne.s32.totalorder %v2980_v17, 4294967196  ;;  %v2985_v37 = vld [vmem:[#allocation22_spill] sm:$0xff] }
 0x216   : > { %v836_v31 = vpop.xlane.xlu0 %835  ;;  %v1118_v21 = vmul.f32 %v1086_v10, %v315_v52  ;;  %vm964_vm4 = vmand %vm900_vm1, %vm932_vm2  ;;  %v1674_v0 = vpop.eup %1673  ;;  %vm898_vm7 = vcmp.ne.s32.totalorder %v2985_v37, 4294967196  ;;  %vm930_vm8 = vcmp.ge.s32.totalorder %v2985_v37, 0  ;;  %vm901_vm1 = vcmp.ne.s32.totalorder %v2991_v24, 4294967196 }
 0x217   : > { %1230 = vperm.xlu2 %1563, %v1115_v51   ;;  %v1056_v34 = vsub.f32 %v1010_v15, %v836_v31  ;;  %v1676_v43 = vpop.eup %1675  ;;  %v2986_v15 = vld [vmem:[#allocation19_spill] sm:$0xff]  ;;  %v2987_v51 = vld [vmem:[#allocation38_spill] sm:$0xff]  ;;  %v1014_v36 = vmul.f32 0.6931472, %v1674_v0  ;;  %vm962_vm12 = vmand %vm898_vm7, %vm930_vm8  ;;  %vm933_vm2 = vcmp.ge.s32.totalorder %v2991_v24, 0 }
 0x218   : > { %1240 = vperm.xlu0 %1564, %v1117_v12   ;;  %vm935_vm11 = vcmp.ge.s32.totalorder %v2986_v15, 0  ;;  %1679 = vlog2.f32 %v2987_v51  ;;  %v1024_v12 = vmul.f32 0.6931472, %v1676_v43  ;;  %v327_v43 = vld [vmem:[%s2471_s9 + $0xd8] sm:$0xff] }
 0x219   : > { %v1088_v30 = vsel %vm960_vm6, %v1056_v34, 0.0  ;;  %v824_v19 = vpop.xlane.xlu2 %823  ;;  %vm934_vm6 = vcmp.ge.s32.totalorder %v2983_v41, 0  ;;  %1681 = vlog2.f32 %v2988_v61  ;;  %v1678_v50 = vpop.eup %1677  ;;  %v321_v34 = vld [vmem:[%s2471_s9 + $0xa8] sm:$0xff] }
 0x21a   : > { %v1052_v26 = vsub.f32 %v1002_v11, %v824_v19  ;;  %v839_v53 = vpop.xlane.xlu1 %838  ;;  %v1120_v23 = vmul.f32 %v1088_v30, %v317_v38  ;;  %v323_v30 = vld [vmem:[%s2471_s9 + $0xb8] sm:$0xff]  ;;  %1683 = vlog2.f32 %v2990_v42  ;;  %v2997_v61 = vld [vmem:[#allocation45_spill] sm:$0xff] }
 0x21b   : > { %v1057_v18 = vsub.f32 %v1012_v39, %v839_v53  ;;  %v2989_v39 = vld [vmem:[#allocation29_spill] sm:$0xff]  ;;  %v1028_v53 = vmul.f32 0.6931472, %v1678_v50 }
 0x21c   : > { %v2559_v20 = vsel %vm956_vm9, %v1052_v26, 0.0  ;;  %vm966_vm9 = vmand %vm902_vm5, %vm934_vm6  ;;  %vm905_vm14 = vcmp.ne.s32.totalorder %v2989_v39, 4294967196 }
 0x21d   : > { %v1089_v45 = vsel %vm961_vm10, %v1057_v18, 0.0  ;;  %vm903_vm10 = vcmp.ne.s32.totalorder %v2986_v15, 4294967196  ;;  %vm965_vm6 = vmand %vm901_vm1, %vm933_vm2 }
 0x21e   : > { %v845_v8 = vpop.xlane.xlu0 %844  ;;  %v1121_v16 = vmul.f32 %v1089_v45, %v318_v6  ;;  %vm967_vm13 = vmand %vm903_vm10, %vm935_vm11  ;;  %v1680_v26 = vpop.eup %1679  ;;  %v2993_v45 = vld [vmem:[#allocation42_spill] sm:$0xff] }
 0x21f   : > { %1245 = vperm.xlu2 %1563, %v1118_v21   ;;  %v1059_v62 = vsub.f32 %v1016_v4, %v845_v8  ;;  %v1682_v18 = vpop.eup %1681  ;;  %v2992_v21 = vld [vmem:[#allocation24_spill] sm:$0xff]  ;;  %1685 = vlog2.f32 %v2993_v45  ;;  %v1020_v57 = vmul.f32 0.6931472, %v1680_v26 }
 0x220   : > { %1297 = vperm.xlu0 %1564, %v1120_v23   ;;  %vm938_vm5 = vcmp.ge.s32.totalorder %v2992_v21, 0  ;;  %v1030_v23 = vmul.f32 0.6931472, %v1682_v18  ;;  %v1684_v46 = vpop.eup %1683  ;;  %1687 = vlog2.f32 %v2355_v1  ;;  %v304_v18 = vld [vmem:[%s2471_s9 + $0x20] sm:$0xff] }
 0x221   : > { %v1091_v44 = vsel %vm963_vm15, %v1059_v62, 0.0  ;;  %v833_v47 = vpop.xlane.xlu2 %832  ;;  %vm937_vm15 = vcmp.ge.s32.totalorder %v2989_v39, 0  ;;  %v324_v62 = vld [vmem:[%s2471_s9 + $0xc0] sm:$0xff]  ;;  %1689 = vlog2.f32 %v2997_v61  ;;  %v1107_v24 = vmul.f32 %v2508_v58, %v304_v18 }
 0x222   : > { %v1055_v5 = vsub.f32 %v1008_v28, %v833_v47  ;;  %v848_v2 = vpop.xlane.xlu1 %847  ;;  %v1123_v32 = vmul.f32 %v1091_v44, %v320_v49  ;;  %v326_v44 = vld [vmem:[%s2471_s9 + $0xd0] sm:$0xff]  ;;  %v2995_v49 = vld [vmem:[#allocation33_spill] sm:$0xff] }
 0x223   : > { %v1060_v14 = vsub.f32 %v1018_v55, %v848_v2  ;;  %v2994_v55 = vld [vmem:[#allocation34_spill] sm:$0xff]  ;;  %vm904_vm10 = vcmp.ne.s32.totalorder %v2995_v49, 4294967196  ;;  %vm936_vm11 = vcmp.ge.s32.totalorder %v2995_v49, 0 }
 0x224   : > { %v2576_v3 = vsel %vm959_vm3, %v1055_v5, 0.0  ;;  %vm969_vm3 = vmand %vm905_vm14, %vm937_vm15  ;;  %vm908_vm8 = vcmp.ne.s32.totalorder %v2994_v55, 4294967196  ;;  %v1034_v5 = vmul.f32 0.6931472, %v1684_v46 }
 0x225   : > { %v1092_v60 = vsel %vm964_vm4, %v1060_v14, 0.0  ;;  %vm906_vm4 = vcmp.ne.s32.totalorder %v2992_v21, 4294967196  ;;  %v1686_v6 = vpop.eup %1685  ;;  %v310_v21 = vld [vmem:[%s2471_s9 + $0x50] sm:$0xff] }
 0x226   : > { %v854_v63 = vpop.xlane.xlu0 %853  ;;  %v1124_v48 = vmul.f32 %v1092_v60, %v321_v34  ;;  %vm970_vm7 = vmand %vm906_vm4, %vm938_vm5  ;;  %v1688_v15 = vpop.eup %1687  ;;  %v2998_v34 = vld [vmem:[#allocation40_spill] sm:$0xff]  ;;  %v1113_v45 = vmul.f32 %v2542_v33, %v310_v21  ;;  %v325_v33 = vld [vmem:[%s2471_s9 + $0xc8] sm:$0xff] }
 0x227   : > { %1302 = vperm.xlu2 %1563, %v1121_v16   ;;  %v1062_v10 = vsub.f32 %v1022_v9, %v854_v63  ;;  %v1026_v9 = vmul.f32 0.6931472, %v1686_v6  ;;  %v1032_v1 = vmul.f32 0.6931472, %v1688_v15  ;;  %v1690_v50 = vpop.eup %1689  ;;  %vm910_vm2 = vcmp.ne.s32.totalorder %v2998_v34, 4294967196 }
 0x228   : > { %1312 = vperm.xlu0 %1564, %v1123_v32   ;;  %v329_v32 = vld [vmem:[%s2471_s9 + $0xe8] sm:$0xff] }
 0x229   : > { %v1094_v31 = vsel %vm966_vm9, %v1062_v10, 0.0  ;;  %v842_v25 = vpop.xlane.xlu2 %841  ;;  %vm940_vm9 = vcmp.ge.s32.totalorder %v2994_v55, 0  ;;  %v2996_v10 = vld [vmem:[#allocation36_spill] sm:$0xff]  ;;  %v3000_v55 = vld [vmem:[#allocation43_spill] sm:$0xff] }
 0x22a   : > { %v1058_v11 = vsub.f32 %v1014_v36, %v842_v25  ;;  %v857_v40 = vpop.xlane.xlu1 %856  ;;  %v1126_v54 = vmul.f32 %v1094_v31, %v323_v30  ;;  %vm907_vm14 = vcmp.ne.s32.totalorder %v2996_v10, 4294967196  ;;  %vm939_vm15 = vcmp.ge.s32.totalorder %v2996_v10, 0 }
 0x22b   : > { %v1063_v19 = vsub.f32 %v1024_v12, %v857_v40  ;;  %vm971_vm1 = vmand %vm907_vm14, %vm939_vm15  ;;  %1691 = vlog2.f32 %v3000_v55 }
 0x22c   : > { %v2593_v52 = vsel %vm962_vm12, %v1058_v11, 0.0  ;;  %vm972_vm12 = vmand %vm908_vm8, %vm940_vm9  ;;  %v1038_v11 = vmul.f32 0.6931472, %v1690_v50 }
 0x22d   : > { %v1095_v38 = vsel %vm967_vm13, %v1063_v19, 0.0  ;;  %vm968_vm13 = vmand %vm904_vm10, %vm936_vm11  ;;  %v2999_v19 = vld [vmem:[#allocation5_spill] sm:$0xff] }
 0x22e   : > { %v863_v4 = vpop.xlane.xlu0 %862  ;;  %v1127_v2 = vmul.f32 %v1095_v38, %v324_v62  ;;  %v328_v62 = vld [vmem:[%s2471_s9 + $0xe0] sm:$0xff] }
 0x22f   : > { %1317 = vperm.xlu2 %1563, %v1124_v48   ;;  %v1065_v22 = vsub.f32 %v1028_v53, %v863_v4  ;;  %v301_v48 = vld [vmem:[%s2471_s9 + $0x8] sm:$0xff] }
 0x230   : > { %1327 = vperm.xlu0 %1564, %v1126_v54   ;;  %v1104_v38 = vmul.f32 %v2460_v35, %v301_v48  ;;  %v307_v54 = vld [vmem:[%s2471_s9 + $0x38] sm:$0xff] }
 0x231   : > { %v1097_v8 = vsel %vm969_vm3, %v1065_v22, 0.0  ;;  %v851_v17 = vpop.xlane.xlu2 %850  ;;  %vm942_vm3 = vcmp.ge.s32.totalorder %v2998_v34, 0  ;;  %v1110_v4 = vmul.f32 %v2525_v13, %v307_v54  ;;  %v313_v22 = vld [vmem:[%s2471_s9 + $0x68] sm:$0xff]  ;;  %v322_v13 = vld [vmem:[%s2471_s9 + $0xb0] sm:$0xff] }
 0x232   : > { %v1061_v28 = vsub.f32 %v1020_v57, %v851_v17  ;;  %v866_v7 = vpop.xlane.xlu1 %865  ;;  %v1129_v14 = vmul.f32 %v1097_v8, %v326_v44  ;;  %vm974_vm4 = vmand %vm910_vm2, %vm942_vm3  ;;  %v1116_v35 = vmul.f32 %v2559_v20, %v313_v22  ;;  %v316_v57 = vld [vmem:[%s2471_s9 + $0x80] sm:$0xff] }
 0x233   : > { %v1066_v47 = vsub.f32 %v1030_v23, %v866_v7  ;;  %v1119_v58 = vmul.f32 %v2576_v3, %v316_v57  ;;  %v319_v23 = vld [vmem:[%s2471_s9 + $0x98] sm:$0xff]  ;;  %v1692_v3 = vpop.eup %1691 }
 0x234   : > { %v2604_v59 = vsel %vm965_vm6, %v1061_v28, 0.0  ;;  %v1122_v8 = vmul.f32 %v2593_v52, %v319_v23  ;;  %v331_v28 = vld [vmem:[%s2471_s9 + $0xf8] sm:$0xff]  ;;  %vm941_vm6 = vcmp.ge.s32.totalorder %v2452_v29, 0  ;;  %v1036_v52 = vmul.f32 0.6931472, %v1692_v3 }
 0x235   : > { %v1098_v41 = vsel %vm970_vm7, %v1066_v47, 0.0  ;;  %v1125_v17 = vmul.f32 %v2604_v59, %v322_v13  ;;  %v330_v59 = vld [vmem:[%s2471_s9 + $0xf0] sm:$0xff] }
 0x236   : > { %v872_v27 = vpop.xlane.xlu0 %871  ;;  %v1130_v51 = vmul.f32 %v1098_v41, %v327_v43 }
 0x237   : > { %1332 = vperm.xlu2 %1563, %v1127_v2   ;;  %v1068_v0 = vsub.f32 %v1034_v5, %v872_v27 }
 0x238   : > { %1342 = vperm.xlu0 %1564, %v1129_v14   ;;  %v3001_v14 = vlaneseq }
 0x239   : > { %v1100_v16 = vsel %vm972_vm12, %v1068_v0, 0.0  ;;  %v860_v60 = vpop.xlane.xlu2 %859 }
 0x23a   : > { %v1064_v37 = vsub.f32 %v1026_v9, %v860_v60  ;;  %v1132_v36 = vmul.f32 %v1100_v16, %v329_v32  ;;  %v2643_v27 = vshrl.u32 %v3001_v14, 7 }
 0x23c   : > { %v1096_v63 = vsel %vm968_vm13, %v1064_v37, 0.0  ;;  %v2646_v9 = vadd.s32 16, %v2643_v27  ;;  %v2649_v16 = vadd.s32 8, %v2643_v27  ;;  %vm1152_vm8 = vcmp.eq.s32.totalorder %v2643_v27, %v2351_v56 }
 0x23d   : > { %v1128_v46 = vmul.f32 %v1096_v63, %v325_v33  ;;  %v2656_v60 = vadd.s32 24, %v2643_v27  ;;  %v2672_v10 = vadd.s32 40, %v2643_v27  ;;  %v2720_v21 = vadd.s32 88, %v2643_v27 }
 0x23e   : > { %vm1154_vm9 = vcmp.eq.s32.totalorder %v2646_v9, %v2351_v56  ;;  %vm1153_vm10 = vcmp.eq.s32.totalorder %v2649_v16, %v2351_v56 }
 0x23f   : > { %1347 = vperm.xlu2 %1563, %v1130_v51   ;;  %vm1155_vm11 = vcmp.eq.s32.totalorder %v2656_v60, %v2351_v56  ;;  %vm1157_vm12 = vcmp.eq.s32.totalorder %v2672_v10, %v2351_v56  ;;  %vm1163_vm3 = vcmp.eq.s32.totalorder %v2720_v21, %v2351_v56 }
 0x240   : > { %1357 = vperm.xlu0 %1564, %v1132_v36   ;;  %v2675_v36 = vadd.s32 32, %v2643_v27 }
 0x241   : > { %v869_v12 = vpop.xlane.xlu2 %868 }
 0x242   : > { %v1067_v31 = vsub.f32 %v1032_v1, %v869_v12  ;;  %v2681_v12 = vadd.s32 48, %v2643_v27  ;;  %vm1156_vm13 = vcmp.eq.s32.totalorder %v2675_v36, %v2351_v56 }
 0x244   : > { %v1099_v25 = vsel %vm971_vm1, %v1067_v31, 0.0  ;;  %vm1158_vm14 = vcmp.eq.s32.totalorder %v2681_v12, %v2351_v56 }
 0x245   : > { %v1131_v20 = vmul.f32 %v1099_v25, %v328_v62  ;;  %v2744_v62 = vadd.s32 112, %v2643_v27 }
 0x249   : > { %v878_v40 = vpop.xlane.xlu2 %877  ;;  %v715_v39 = vpop.permute.xlu0 %714 }
 0x24a   : > { %v1070_v30 = vsub.f32 %v1038_v11, %v878_v40  ;;  %vm749_vm5 = vcmp.eq.s32.totalorder %v2351_v56, %v715_v39  ;;  %v2696_v39 = vadd.s32 64, %v2643_v27 }
 0x24b   : > { %v781_v42 = vsel %vm749_vm5, %v2999_v19, 0.0  ;;  %v2699_v19 = vadd.s32 56, %v2643_v27 }
 0x24c   : > { %v1102_v26 = vsel %vm974_vm4, %v1070_v30, 0.0  ;;  %v873_v53 = vsel %vm332_vm0, %v781_v42, 0.0  ;;  %vm909_vm0 = vcmp.ne.s32.totalorder %v2452_v29, 4294967196  ;;  %vm1160_vm15 = vcmp.eq.s32.totalorder %v2696_v39, %v2351_v56 }
 0x24d   : > { %874 = vadd.xlane.f32.xlu1 %v873_v53  ;;  %v1134_v7 = vmul.f32 %v1102_v26, %v331_v28  ;;  %vm973_vm7 = vmand %vm909_vm0, %vm941_vm6  ;;  %v2705_v53 = vadd.s32 72, %v2643_v27  ;;  %vm1159_vm1 = vcmp.eq.s32.totalorder %v2699_v19, %v2351_v56  ;;  %vm1166_vm0 = vcmp.eq.s32.totalorder %v2744_v62, %v2351_v56 }
 0x24f   : > { %vm1161_vm2 = vcmp.eq.s32.totalorder %v2705_v53, %v2351_v56 }
 0x259   : > { %v1181_v49 = vpop.permute.xlu2 %1180 }
 0x25a   : > { %v1250_v51 = vsel %vm1154_vm9, %v1181_v49, 0.0 }
 0x261   : > { %v1201_v29 = vpop.permute.xlu2 %1200 }
 0x262   : > { %v1171_v44 = vpop.permute.xlu0 %1170  ;;  %v1254_v26 = vsel %vm1158_vm14, %v1201_v29, 0.0 }
 0x263   : > { %v1248_v37 = vsel %vm1152_vm8, %v1171_v44, 0.0 }
 0x266   : > { %1175 = vperm.xlu1 %1562, %v1104_v38  }
 0x269   : > { %v1216_v31 = vpop.permute.xlu2 %1215 }
 0x26a   : > { %v1186_v41 = vpop.permute.xlu0 %1185  ;;  %v1257_v57 = vsel %vm1161_vm2, %v1216_v31, 0.0 }
 0x26b   : > { %v1251_v1 = vsel %vm1155_vm11, %v1186_v41, 0.0 }
 0x26e   : > { %1190 = vperm.xlu1 %1562, %v1107_v24  }
 0x271   : > { %v1231_v24 = vpop.permute.xlu2 %1230 }
 0x272   : > { %v1196_v0 = vpop.permute.xlu0 %1195 }
 0x273   : > { %v1253_v40 = vsel %vm1157_vm12, %v1196_v0, 0.0 }
 0x276   : > { %1205 = vperm.xlu1 %1562, %v1110_v4  }
 0x27a   : > { %v1211_v63 = vpop.permute.xlu0 %1210 }
 0x27b   : > { %v1256_v4 = vsel %vm1160_vm15, %v1211_v63, 0.0 }
 0x27e   : > { %1220 = vperm.xlu1 %1562, %v1113_v45   ;;  %v2723_v45 = vadd.s32 80, %v2643_v27 }
 0x280   : > { %vm1162_vm4 = vcmp.eq.s32.totalorder %v2723_v45, %v2351_v56 }
 0x282   : > { %v1226_v30 = vpop.permute.xlu0 %1225 }
 0x283   : > { %v1259_v33 = vsel %vm1163_vm3, %v1226_v30, 0.0 }
 0x286   : > { %1235 = vperm.xlu1 %1562, %v1116_v35  }
 0x28a   : > { %v1241_v35 = vpop.permute.xlu0 %1240 }
 0x28e   : > { %1292 = vperm.xlu1 %1562, %v1119_v58   ;;  %v2729_v58 = vadd.s32 96, %v2643_v27 }
 0x290   : > { %vm1164_vm5 = vcmp.eq.s32.totalorder %v2729_v58, %v2351_v56 }
 0x291   : > { %v1260_v55 = vsel %vm1164_vm5, %v1231_v24, 0.0 }
 0x292   : > { %v1298_v3 = vpop.permute.xlu0 %1297 }
 0x293   : > { %v1371_v63 = vsel %vm1153_vm10, %v1298_v3, 0.0 }
 0x296   : > { %1307 = vperm.xlu1 %1562, %v1122_v8  }
 0x29e   : > { %1322 = vperm.xlu1 %1562, %v1125_v17  }
 0x2a6   : > { %1337 = vperm.xlu1 %1562, %v1128_v46   ;;  %v1246_v46 = vpop.permute.xlu2 %1245 }
 0x2ae   : > { %1352 = vperm.xlu1 %1562, %v1131_v20   ;;  %v2747_v20 = vadd.s32 104, %v2643_v27  ;;  %v1303_v41 = vpop.permute.xlu2 %1302 }
 0x2b0   : > { %vm1165_vm6 = vcmp.eq.s32.totalorder %v2747_v20, %v2351_v56 }
 0x2b6   : > { %1367 = vperm.xlu1 %1562, %v1134_v7   ;;  %v2750_v7 = vadd.s32 120, %v2643_v27  ;;  %v1318_v31 = vpop.permute.xlu2 %1317 }
 0x2be   : > { %v1333_v36 = vpop.permute.xlu2 %1332 }
 0x2c0   : > { %v875_v47 = vpop.xlane.xlu1 %874 }
 0x2c1   : > { %v1069_v6 = vsub.f32 %v1036_v52, %v875_v47 }
 0x2c3   : > { %v1101_v5 = vsel %vm973_vm7, %v1069_v6, 0.0  ;;  %vm1167_vm7 = vcmp.eq.s32.totalorder %v2750_v7, %v2351_v56  ;;  %v1262_v6 = vsel %vm1166_vm0, %v1241_v35, 0.0 }
 0x2c4   : > { %v1133_v2 = vmul.f32 %v1101_v5, %v330_v59 }
 0x2c6   : > { %1362 = vperm.xlu2 %1563, %v1133_v2   ;;  %v1263_v2 = vsel %vm1167_vm7, %v1246_v46, 0.0 }
 0x2d8   : > { %v1176_v43 = vpop.permute.xlu1 %1175 }
 0x2d9   : > { %v1249_v32 = vsel %vm1153_vm10, %v1176_v43, 0.0 }
 0x2da   : > { %v1264_v15 = vadd.f32 %v1249_v32, %v1248_v37  ;;  %v1313_v37 = vpop.permute.xlu0 %1312 }
 0x2db   : > { %v1374_v9 = vsel %vm1156_vm13, %v1313_v37, 0.0 }
 0x2dc   : > { %v1265_v61 = vadd.f32 %v1264_v15, %v1250_v51 }
 0x2de   : > { %v1266_v50 = vadd.f32 %v1265_v61, %v1251_v1  ;;  %v1372_v1 = vsel %vm1154_vm9, %v1303_v41, 0.0 }
 0x2e0   : > { %v1191_v25 = vpop.permute.xlu1 %1190 }
 0x2e1   : > { %v1252_v34 = vsel %vm1156_vm13, %v1191_v25, 0.0 }
 0x2e2   : > { %v1267_v11 = vadd.f32 %v1266_v50, %v1252_v34  ;;  %v1328_v30 = vpop.permute.xlu0 %1327 }
 0x2e4   : > { %v1268_v42 = vadd.f32 %v1267_v11, %v1253_v40 }
 0x2e6   : > { %v1269_v38 = vadd.f32 %v1268_v42, %v1254_v26 }
 0x2e8   : > { %v1206_v48 = vpop.permute.xlu1 %1205 }
 0x2e9   : > { %v1255_v18 = vsel %vm1159_vm1, %v1206_v48, 0.0 }
 0x2ea   : > { %v1270_v54 = vadd.f32 %v1269_v38, %v1255_v18  ;;  %v1377_v18 = vsel %vm1159_vm1, %v1328_v30, 0.0 }
 0x2ec   : > { %v1271_v22 = vadd.f32 %v1270_v54, %v1256_v4  ;;  %v1343_v54 = vpop.permute.xlu0 %1342  ;;  %v1378_v4 = vsel %vm1160_vm15, %v1333_v36, 0.0 }
 0x2ee   : > { %v1272_v8 = vadd.f32 %v1271_v22, %v1257_v57  ;;  %v1380_v57 = vsel %vm1162_vm4, %v1343_v54, 0.0 }
 0x2f0   : > { %v1221_v23 = vpop.permute.xlu1 %1220 }
 0x2f1   : > { %v1258_v13 = vsel %vm1162_vm4, %v1221_v23, 0.0  ;;  %v1348_v23 = vpop.permute.xlu2 %1347 }
 0x2f2   : > { %v1273_v17 = vadd.f32 %v1272_v8, %v1258_v13  ;;  %v1381_v8 = vsel %vm1163_vm3, %v1348_v23, 0.0 }
 0x2f4   : > { %v1274_v28 = vadd.f32 %v1273_v17, %v1259_v33  ;;  %v1358_v39 = vpop.permute.xlu0 %1357 }
 0x2f5   : > { %v1383_v45 = vsel %vm1165_vm6, %v1358_v39, 0.0 }
 0x2f6   : > { %v1275_v52 = vadd.f32 %v1274_v28, %v1260_v55 }
 0x2f8   : > { %v1236_v44 = vpop.permute.xlu1 %1235 }
 0x2f9   : > { %v1261_v47 = vsel %vm1165_vm6, %v1236_v44, 0.0 }
 0x2fa   : > { %v1276_v59 = vadd.f32 %v1275_v52, %v1261_v47 }
 0x2fc   : > { %v1277_v5 = vadd.f32 %v1276_v59, %v1262_v6 }
 0x2fe   : > { %v1278_v49 = vadd.f32 %v1277_v5, %v1263_v2 }
 0x300   : > { %v1279_v0 = vrot.slane %v1278_v49, 4  ;;  %v1293_v29 = vpop.permute.xlu1 %1292 }
 0x301   : > { %v1370_v43 = vsel %vm1152_vm8, %v1293_v29, 0.0  ;;  %vm2786_vm8 = vcmp.lt.s32.totalorder %v3001_v14, 128  ;;  %v1375_v14 = vsel %vm1157_vm12, %v1318_v31, 0.0 }
 0x302   : > { %v1280_v32 = vadd.f32 %v1279_v0, %v1278_v49  ;;  %v1386_v51 = vadd.f32 %v1371_v63, %v1370_v43 }
 0x304   : > { %v1281_v15 = vrot.slane %v1280_v32, 2  ;;  %v1387_v50 = vadd.f32 %v1386_v51, %v1372_v1 }
 0x306   : > { %v1282_v61 = vadd.f32 %v1281_v15, %v1280_v32 }
 0x308   : > { %v1283_v25 = vrot.slane %v1282_v61, 1  ;;  %v1308_v27 = vpop.permute.xlu1 %1307 }
 0x309   : > { %v1373_v34 = vsel %vm1155_vm11, %v1308_v27, 0.0 }
 0x30a   : > { %v1388_v11 = vadd.f32 %v1387_v50, %v1373_v34  ;;  %v1284_v40 = vadd.f32 %v1283_v25, %v1282_v61 }
 0x30c   : > { %v1389_v42 = vadd.f32 %v1388_v11, %v1374_v9  ;;  %1289 = vst.msk [vmem:[%s2793_s17] sm:$0x1] %vm2786_vm8, %v1284_v40 }
 0x30e   : > { %v1390_v26 = vadd.f32 %v1389_v42, %v1375_v14 }
 0x310   : > { %v1323_v60 = vpop.permute.xlu1 %1322 }
 0x311   : > { %v1376_v48 = vsel %vm1158_vm14, %v1323_v60, 0.0 }
 0x312   : > { %v1391_v38 = vadd.f32 %v1390_v26, %v1376_v48 }
 0x314   : > { %v1392_v24 = vadd.f32 %v1391_v38, %v1377_v18 }
 0x316   : > { %v1393_v22 = vadd.f32 %v1392_v24, %v1378_v4 }
 0x318   : > { %v1338_v10 = vpop.permute.xlu1 %1337 }
 0x319   : > { %v1379_v35 = vsel %vm1161_vm2, %v1338_v10, 0.0 }
 0x31a   : > { %v1394_v12 = vadd.f32 %v1393_v22, %v1379_v35 }
 0x31c   : > { %v1395_v19 = vadd.f32 %v1394_v12, %v1380_v57 }
 0x31e   : > { %v1396_v17 = vadd.f32 %v1395_v19, %v1381_v8 }
 0x320   : > { %v1353_v13 = vpop.permute.xlu1 %1352  ;;  %v1363_v46 = vpop.permute.xlu2 %1362 }
 0x321   : > { %v1382_v53 = vsel %vm1164_vm5, %v1353_v13, 0.0  ;;  %v1384_v21 = vsel %vm1166_vm0, %v1363_v46, 0.0 }
 0x322   : > { %v1397_v33 = vadd.f32 %v1396_v17, %v1382_v53 }
 0x324   : > { %v1398_v28 = vadd.f32 %v1397_v33, %v1383_v45 }
 0x326   : > { %v1399_v3 = vadd.f32 %v1398_v28, %v1384_v21 }
 0x328   : > { %v1368_v55 = vpop.permute.xlu1 %1367 }
 0x329   : > { %v1385_v58 = vsel %vm1167_vm7, %v1368_v55, 0.0 }
 0x32a   : > { %v1400_v44 = vadd.f32 %v1399_v3, %v1385_v58 }
 0x32c   : > { %v1401_v52 = vrot.slane %v1400_v44, 4 }
 0x32e   : > { %v1402_v47 = vadd.f32 %v1401_v52, %v1400_v44 }
 0x330   : > { %v1403_v20 = vrot.slane %v1402_v47, 2 }
 0x332   : > { %v1404_v62 = vadd.f32 %v1403_v20, %v1402_v47 }
 0x334   : > { %v1405_v59 = vrot.slane %v1404_v62, 1 }
 0x336   : > { %v1406_v6 = vadd.f32 %v1405_v59, %v1404_v62 }
 0x338   : > { %1407 = vst.msk [vmem:[%s2793_s17 + $0x1] sm:$0x1] %vm2786_vm8, %v1406_v6 }
 0x339   : > { %1720 = shalt.err (!%p1717_p4)
}
 0x33a   : > { %1522 = dma.vmem_to_hbm [thread:$0]  (%p1816_p5), %s1422_s26, 32, %s1424_s27, %s1409_s28  }
 0x33b PF: > { %p1528_p7 = scmp.ge.s32.totalorder %s1755_s15, 2  ;;  %s1435_s8 = sand.u32 1, %s1743_s12  }
 0x33c   : > { %s1436_s9 = scalar_lea.sflag [#allocation3], %s1435_s8 }
 0x33d   : > { %p1525_p8 = pnand %p1528_p7, %p1820_p6 }
 0x33f   : > { %p1526_p9 = pneg %p1525_p8 }
 0x341   : > { %1738 = dma.done.wait (%p1526_p9), %s1436_s9, 32  }
 0x342   : > { %1740 = vsyncadd (%p1526_p9), %s1436_s9, 4294967264  ;;  %p13_p10 = scmp.ge.s32.totalorder %s1803_s18, 4   ;;  %s3004_s12 = smov %s1747_s13 }
 0x343   : > { %s3005_s13 = smov %s1751_s14  ;;  %s3006_s14 = smov %s1814_s21 }
 0x344   : > { %s3007_s15 = smov %s1803_s18  ;;  %15 = sbr.rel (!%p13_p10) target bundleno = 3 (0x3), region = 73 }
 0x349   :  { %1442 = vsyncpa [#allocation3], 1 }
 0x34a   :  { %1444 = vsyncpa [#allocation3 + $0x1], 1 }

</bundles_post_ra>
